<compile_context>
chip_gen: v7x
topology: tpu7x:2x2x1
jax: 0.10.0
libtpu: 0.0.40
codegen_flags: <defaults>
</compile_context>

<pallas_src>
import math

import numpy as np

import jax
import jax.numpy as jnp
from jax.experimental import pallas as pl
from jax.experimental.pallas import tpu as pltpu


_CONV_STRIDES = (2, 1, 2, 1, 2)      # strides of the 5 convs in the Sequential
_INV_SQRT2 = 0.7071067811865476


# ----------------------------------------------------------------------------
# In-kernel math helpers (f32 VPU math; reciprocal on the EUP)
# ----------------------------------------------------------------------------
def _erf(x):
    # Abramowitz & Stegun 7.1.26 rational approximation of erf (|err| < 1.5e-7).
    a1, a2, a3, a4, a5 = (0.254829592, -0.284496736, 1.421413741,
                          -1.453152027, 1.061405429)
    p = 0.3275911
    sgn = jnp.where(x >= 0.0, 1.0, -1.0)
    ax = jnp.abs(x)
    t = pl.reciprocal(1.0 + p * ax, approx=True)      # EUP slot, ~free
    poly = ((((a5 * t + a4) * t + a3) * t + a2) * t + a1) * t
    return sgn * (1.0 - poly * jnp.exp(-ax * ax))


def _gelu(x):
    return 0.5 * x * (1.0 + _erf(x * _INV_SQRT2))


# ----------------------------------------------------------------------------
# Fused Pallas kernel: 5 convs (as 2 matmuls each) + GELUs + Linear (2 matmuls)
# ----------------------------------------------------------------------------
def _fused_encoder_kernel(*refs):
    """refs = [x, (R_all, W2, bias) x 5 conv layers, (Rl_all, Wl, bias_l), out]."""
    x_ref, o_ref = refs[0], refs[-1]
    layer_refs = refs[1:-1]
    n_conv = (len(layer_refs) - 3) // 3

    x = x_ref[...]                                     # f32, rows=(b,h), cols=(w,c)
    for l in range(n_conv):
        r_ref, w_ref, b_ref = layer_refs[3 * l:3 * l + 3]
        # One stacked row-gather matmul over all three kernel rows (kh).
        g = jnp.dot(r_ref[...], x.astype(jnp.bfloat16),
                    preferred_element_type=jnp.float32)          # (3*B*Ho, W*Cin)
        blk = g.shape[0] // 3
        # Lane-concat the three kh blocks (sublane-aligned slices, 128-wide lanes),
        # then a single wide-K contraction against the stacked conv weights.
        cat = jnp.concatenate(
            [g[kh * blk:(kh + 1) * blk, :] for kh in range(3)], axis=-1)
        acc = jnp.dot(cat.astype(jnp.bfloat16), w_ref[...],
                      preferred_element_type=jnp.float32)        # (B*Ho, Wo*Cout)
        x = _gelu(acc + b_ref[...])

    # Final Linear: flatten (NCHW permutation folded into Wl on the host) as one
    # stacked gather matmul + one wide-K matmul.
    rl_ref, wl_ref, bl_ref = layer_refs[-3:]
    nblk = wl_ref.shape[0] // x.shape[1]               # = H4 (spatial rows)
    blk = rl_ref.shape[0] // nblk                      # batch rows per block (8-padded)
    g = jnp.dot(rl_ref[...], x.astype(jnp.bfloat16),
                preferred_element_type=jnp.float32)              # (H4*blk, lane_w)
    cat = jnp.concatenate(
        [g[i * blk:(i + 1) * blk, :] for i in range(nblk)], axis=-1)
    out_p = jnp.dot(cat.astype(jnp.bfloat16), wl_ref[...],
                    preferred_element_type=jnp.float32)          # (blk, latent)
    o_ref[...] = (out_p[:o_ref.shape[0], :] + bl_ref[...]).astype(o_ref.dtype)


def _full_spec(shape):
    nd = len(shape)
    return pl.BlockSpec(tuple(shape), lambda i, _nd=nd: (0,) * _nd)


def encoder_forward(x_nchw, fused_inputs):
    """x_nchw: (B, C, H, W) like the PyTorch module.  fused_inputs comes from
    build_fused_inputs().  Runs the whole encoder in one fused Pallas kernel."""
    B, C, H, W = x_nchw.shape
    latent = fused_inputs[-1].shape[-1]

    # Layer-0 padded channel count is encoded in the layer-0 W2 row count.
    cin_p = fused_inputs[1].shape[0] // (3 * W)
    x_nhwc = jnp.transpose(x_nchw, (0, 2, 3, 1))
    if cin_p != C:
        x_nhwc = jnp.pad(x_nhwc, ((0, 0), (0, 0), (0, 0), (0, cin_p - C)))
    x2 = x_nhwc.reshape(B * H, W * cin_p)              # rows=(b,h), cols=(w,c)
    inputs = (x2,) + tuple(fused_inputs)

    # Advisory cost estimate so XLA schedules neighbours around this small call.
    n_conv = (len(fused_inputs) - 3) // 3
    flops, trans = 0, 0
    x_cols = x2.shape[1]
    for l in range(n_conv):
        r, w2, _ = fused_inputs[3 * l:3 * l + 3]
        rows_out = r.shape[0] // 3
        flops += 2 * r.shape[0] * r.shape[1] * x_cols            # row-gather matmul
        flops += 2 * rows_out * w2.shape[0] * w2.shape[1]        # conv contraction
        trans += 2 * rows_out * w2.shape[1]                      # exp + recip per GELU
        x_cols = w2.shape[1]
    rl, wl, _ = fused_inputs[-3:]
    nblk = wl.shape[0] // x_cols
    flops += 2 * rl.shape[0] * rl.shape[1] * x_cols
    flops += 2 * (rl.shape[0] // nblk) * wl.shape[0] * wl.shape[1]
    bytes_accessed = (sum(int(np.prod(a.shape)) * a.dtype.itemsize for a in inputs)
                      + B * latent * 4)

    # One grid step: all weights + activations stay VMEM-resident (no per-layer
    # HBM round trips).  See batch-scaling note at the top for large B.
    return pl.pallas_call(
        _fused_encoder_kernel,
        out_shape=jax.ShapeDtypeStruct((B, latent), jnp.float32),
        grid=(1,),
        in_specs=[_full_spec(a.shape) for a in inputs],
        out_specs=_full_spec((B, latent)),
        compiler_params=pltpu.CompilerParams(
            dimension_semantics=("arbitrary",)),
        cost_estimate=pl.CostEstimate(flops=int(flops),
                                      transcendentals=int(trans),
                                      bytes_accessed=int(bytes_accessed)),
    )(*inputs)


# ----------------------------------------------------------------------------
# Parameter init (PyTorch layouts) + one-time host-side preprocessing
# ----------------------------------------------------------------------------
def init_encoder_params(key, num_input_channels, base_channel_size, latent_dim):
    c_hid = base_channel_size
    cfg = [(num_input_channels, c_hid), (c_hid, c_hid), (c_hid, 2 * c_hid),
           (2 * c_hid, 2 * c_hid), (2 * c_hid, 2 * c_hid)]
    keys = jax.random.split(key, 2 * len(cfg) + 2)
    params = {}
    for i, (ci, co) in enumerate(cfg):
        bound = 1.0 / math.sqrt(ci * 9)
        params[f"conv{i}_w"] = jax.random.uniform(
            keys[2 * i], (co, ci, 3, 3), jnp.float32, -bound, bound)  # torch layout
        params[f"conv{i}_b"] = jax.random.uniform(
            keys[2 * i + 1], (co,), jnp.float32, -bound, bound)
    feat = 2 * 16 * c_hid
    bound = 1.0 / math.sqrt(feat)
    params["lin_w"] = jax.random.uniform(
        keys[-2], (latent_dim, feat), jnp.float32, -bound, bound)     # torch layout
    params["lin_b"] = jax.random.uniform(
        keys[-1], (latent_dim,), jnp.float32, -bound, bound)
    return params


def build_fused_inputs(params, batch, height, width, num_input_channels):
    """One-time host-side preprocessing: PyTorch-layout weights -> stacked
    gather/contraction matrices consumed by the fused kernel (bf16 MXU operands,
    f32 biases)."""
    B, H, W, cin = batch, height, width, num_input_channels
    n_conv = len(_CONV_STRIDES)
    arrays = []
    last_pad = 0
    for l, s in enumerate(_CONV_STRIDES):
        w = np.asarray(params[f"conv{l}_w"], np.float32)    # (cout, cin, 3, 3)
        b = np.asarray(params[f"conv{l}_b"], np.float32)    # (cout,)
        cout = w.shape[0]
        assert w.shape[1] == cin
        # Pad layer-0 input channels so the input lane width (W*cin) is a
        # multiple of 128 (dense vreg / MXU feeds).
        cin_p = cin
        if l == 0:
            while (W * cin_p) % 128 != 0:
                cin_p += 1
            if cin_p != cin:
                w = np.pad(w, ((0, 0), (0, cin_p - cin), (0, 0), (0, 0)))
        Ho = (H + 2 - 3) // s + 1
        Wo = (W + 2 - 3) // s + 1

        # Stacked 0/1 row gather: row kh*(B*Ho)+bb*Ho+i picks input row s*i+kh-1.
        R = np.zeros((3, B * Ho, B * H), np.float32)
        for kh in range(3):
            for i in range(Ho):
                h = s * i + kh - 1
                if 0 <= h < H:
                    for bb in range(B):
                        R[kh, bb * Ho + i, bb * H + h] = 1.0
        R_all = np.ascontiguousarray(R).reshape(3 * B * Ho, B * H)

        # sel[w_in, j, kw] = 1 iff w_in == s*j + kw - 1 (column gather + zero pad).
        sel = np.zeros((W, Wo, 3), np.float32)
        for j in range(Wo):
            for kw in range(3):
                wc = s * j + kw - 1
                if 0 <= wc < W:
                    sel[wc, j, kw] = 1.0
        # W2[(kh*W*cin_p + w_in*cin_p + ci), (j*cout + co)] — matches the kernel's
        # kh-major lane concat.
        w_khw = np.transpose(w, (2, 3, 1, 0))               # (kh, kw, cin_p, cout)
        W2 = np.einsum("wjk,hkio->hwijo", sel, w_khw)       # (3, W, cin_p, Wo, cout)
        W2 = np.ascontiguousarray(W2).reshape(3 * W * cin_p, Wo * cout)
        brow = np.tile(b, Wo).reshape(1, Wo * cout)

        # Zero-pad the LAST conv's output lanes to a multiple of 128 so the
        # Linear's lane concat is 128-aligned (GELU(0)=0, so padding stays 0).
        out_w = Wo * cout
        out_w_pad = out_w
        if l == n_conv - 1:
            out_w_pad = -(-out_w // 128) * 128
            if out_w_pad != out_w:
                W2 = np.pad(W2, ((0, 0), (0, out_w_pad - out_w)))
                brow = np.pad(brow, ((0, 0), (0, out_w_pad - out_w)))
        last_pad = out_w_pad - out_w

        arrays += [R_all, W2, brow]
        H, W, cin = Ho, Wo, cout

    # Final Linear: fold the NCHW Flatten permutation into the weight.
    lin_w = np.asarray(params["lin_w"], np.float32)         # (latent, C*H*W) NCHW
    lin_b = np.asarray(params["lin_b"], np.float32)
    latent = lin_w.shape[0]
    C4, H4, W4 = cin, H, W
    assert lin_w.shape[1] == C4 * H4 * W4

    # Stacked gather: block i (padded to 8 sublanes) selects spatial row i of
    # every image:  Rl[i*blk + bb, bb*H4 + i] = 1.
    blk = -(-B // 8) * 8
    Rl = np.zeros((H4 * blk, B * H4), np.float32)
    for i in range(H4):
        for bb in range(B):
            Rl[i * blk + bb, bb * H4 + i] = 1.0

    lane_w = W4 * C4 + last_pad                              # final activation lane width
    Wl = (lin_w.reshape(latent, C4, H4, W4)
               .transpose(2, 3, 1, 0)                        # (H4, W4, C4, latent)
               .reshape(H4, W4 * C4, latent))
    if last_pad:
        Wl = np.pad(Wl, ((0, 0), (0, last_pad), (0, 0)))
    Wl = np.ascontiguousarray(Wl).reshape(H4 * lane_w, latent)
    bl = lin_b.reshape(1, latent)
    arrays += [Rl, Wl, bl]

    out = []
    for idx, a in enumerate(arrays):
        if idx % 3 == 2:     # biases stay f32 (added to the f32 accumulator)
            out.append(jnp.asarray(a, jnp.float32))
        else:                # MXU operands -> bf16 (gather matrices 0/1 -> exact)
            out.append(jnp.asarray(a, jnp.bfloat16))
    return tuple(out)


# ----------------------------------------------------------------------------
if __name__ == "__main__":
    num_input_channels = 3
    base_channel_size = 8      # c_hid
    latent_dim = 32
    batch = 2

    key = jax.random.PRNGKey(0)
    k_param, k_x = jax.random.split(key)
    params = init_encoder_params(
        k_param, num_input_channels, base_channel_size, latent_dim)

    # Input must be 32x32 spatially: three stride-2 convs -> 4x4, and the
    # Linear layer expects 2 * 16 * c_hid = 2*c_hid * 4 * 4 features.
    x = jax.random.normal(
        k_x, (batch, num_input_channels, 32, 32), dtype=jnp.float32)

    fused = build_fused_inputs(params, batch, 32, 32, num_input_channels)

    out = jax.jit(encoder_forward)(x, fused)
    out = jax.block_until_ready(out)
    assert out.shape == (batch, latent_dim), out.shape
    assert bool(jnp.all(jnp.isfinite(out)))
    print("KERNEL_OK")
</pallas_src>

<mosaic_0001>
module attributes {stable_mosaic.version = 11 : i64} {
  func.func @_fused_encoder_kernel(%arg0: i32, %arg1: memref<64x128xf32, #tpu.memory_space<vmem>>, %arg2: memref<96x64xbf16, #tpu.memory_space<vmem>>, %arg3: memref<384x128xbf16, #tpu.memory_space<vmem>>, %arg4: memref<1x128xf32, #tpu.memory_space<vmem>>, %arg5: memref<96x32xbf16, #tpu.memory_space<vmem>>, %arg6: memref<384x128xbf16, #tpu.memory_space<vmem>>, %arg7: memref<1x128xf32, #tpu.memory_space<vmem>>, %arg8: memref<48x32xbf16, #tpu.memory_space<vmem>>, %arg9: memref<384x128xbf16, #tpu.memory_space<vmem>>, %arg10: memref<1x128xf32, #tpu.memory_space<vmem>>, %arg11: memref<48x16xbf16, #tpu.memory_space<vmem>>, %arg12: memref<384x128xbf16, #tpu.memory_space<vmem>>, %arg13: memref<1x128xf32, #tpu.memory_space<vmem>>, %arg14: memref<24x16xbf16, #tpu.memory_space<vmem>>, %arg15: memref<384x128xbf16, #tpu.memory_space<vmem>>, %arg16: memref<1x128xf32, #tpu.memory_space<vmem>>, %arg17: memref<32x8xbf16, #tpu.memory_space<vmem>>, %arg18: memref<512x32xbf16, #tpu.memory_space<vmem>>, %arg19: memref<1x32xf32, #tpu.memory_space<vmem>>, %arg20: memref<2x32xf32, #tpu.memory_space<vmem>>) attributes {dimension_semantics = [#tpu.dimension_semantics<arbitrary>], iteration_bounds = array<i64: 1>, scalar_prefetch = 0 : i64, scratch_operands = 0 : i64, tpu.core_type = #tpu.core_type<tc>, window_params = [{pipeline_mode = #tpu.pipeline_mode<synchronous>, transform_indices = @transform_0, window_bounds = array<i64: 64, 128>}, {pipeline_mode = #tpu.pipeline_mode<synchronous>, transform_indices = @transform_1, window_bounds = array<i64: 96, 64>}, {pipeline_mode = #tpu.pipeline_mode<synchronous>, transform_indices = @transform_2, window_bounds = array<i64: 384, 128>}, {pipeline_mode = #tpu.pipeline_mode<synchronous>, transform_indices = @transform_3, window_bounds = array<i64: 1, 128>}, {pipeline_mode = #tpu.pipeline_mode<synchronous>, transform_indices = @transform_4, window_bounds = array<i64: 96, 32>}, {pipeline_mode = #tpu.pipeline_mode<synchronous>, transform_indices = @transform_5, window_bounds = array<i64: 384, 128>}, {pipeline_mode = #tpu.pipeline_mode<synchronous>, transform_indices = @transform_6, window_bounds = array<i64: 1, 128>}, {pipeline_mode = #tpu.pipeline_mode<synchronous>, transform_indices = @transform_7, window_bounds = array<i64: 48, 32>}, {pipeline_mode = #tpu.pipeline_mode<synchronous>, transform_indices = @transform_8, window_bounds = array<i64: 384, 128>}, {pipeline_mode = #tpu.pipeline_mode<synchronous>, transform_indices = @transform_9, window_bounds = array<i64: 1, 128>}, {pipeline_mode = #tpu.pipeline_mode<synchronous>, transform_indices = @transform_10, window_bounds = array<i64: 48, 16>}, {pipeline_mode = #tpu.pipeline_mode<synchronous>, transform_indices = @transform_11, window_bounds = array<i64: 384, 128>}, {pipeline_mode = #tpu.pipeline_mode<synchronous>, transform_indices = @transform_12, window_bounds = array<i64: 1, 128>}, {pipeline_mode = #tpu.pipeline_mode<synchronous>, transform_indices = @transform_13, window_bounds = array<i64: 24, 16>}, {pipeline_mode = #tpu.pipeline_mode<synchronous>, transform_indices = @transform_14, window_bounds = array<i64: 384, 128>}, {pipeline_mode = #tpu.pipeline_mode<synchronous>, transform_indices = @transform_15, window_bounds = array<i64: 1, 128>}, {pipeline_mode = #tpu.pipeline_mode<synchronous>, transform_indices = @transform_16, window_bounds = array<i64: 32, 8>}, {pipeline_mode = #tpu.pipeline_mode<synchronous>, transform_indices = @transform_17, window_bounds = array<i64: 512, 32>}, {pipeline_mode = #tpu.pipeline_mode<synchronous>, transform_indices = @transform_18, window_bounds = array<i64: 1, 32>}, {pipeline_mode = #tpu.pipeline_mode<synchronous>, transform_indices = @transform_19, window_bounds = array<i64: 2, 32>}]} {
    %c0 = arith.constant 0 : index
    %c0_0 = arith.constant 0 : index
    %0 = vector.load %arg1[%c0, %c0_0] : memref<64x128xf32, #tpu.memory_space<vmem>>, vector<64x128xf32>
    %c0_1 = arith.constant 0 : index
    %c0_2 = arith.constant 0 : index
    %1 = vector.load %arg2[%c0_1, %c0_2] : memref<96x64xbf16, #tpu.memory_space<vmem>>, vector<96x64xbf16>
    %2 = arith.truncf %0 : vector<64x128xf32> to vector<64x128xbf16>
    %cst = arith.constant dense<0.000000e+00> : vector<96x128xf32>
    %3 = tpu.matmul %1, %2, %cst {dimension_numbers = #tpu.dot_dimension_numbers<[1], [0], [0], [1], [0, 0, 1, 1], [], []>} : vector<96x64xbf16>, vector<64x128xbf16>, vector<96x128xf32> -> vector<96x128xf32>
    %4 = vector.extract_strided_slice %3 {offsets = [0, 0], sizes = [32, 128], strides = [1, 1]} : vector<96x128xf32> to vector<32x128xf32>
    %5 = vector.extract_strided_slice %3 {offsets = [32, 0], sizes = [32, 128], strides = [1, 1]} : vector<96x128xf32> to vector<32x128xf32>
    %6 = vector.extract_strided_slice %3 {offsets = [64, 0], sizes = [32, 128], strides = [1, 1]} : vector<96x128xf32> to vector<32x128xf32>
    %7 = tpu.concatenate %4, %5, %6 in 1 : vector<32x128xf32>, vector<32x128xf32>, vector<32x128xf32> -> vector<32x384xf32>
    %8 = arith.truncf %7 : vector<32x384xf32> to vector<32x384xbf16>
    %c0_3 = arith.constant 0 : index
    %c0_4 = arith.constant 0 : index
    %9 = vector.load %arg3[%c0_3, %c0_4] : memref<384x128xbf16, #tpu.memory_space<vmem>>, vector<384x128xbf16>
    %cst_5 = arith.constant dense<0.000000e+00> : vector<32x128xf32>
    %10 = tpu.matmul %8, %9, %cst_5 {dimension_numbers = #tpu.dot_dimension_numbers<[1], [0], [0], [1], [0, 0, 1, 1], [], []>} : vector<32x384xbf16>, vector<384x128xbf16>, vector<32x128xf32> -> vector<32x128xf32>
    %c0_6 = arith.constant 0 : index
    %c0_7 = arith.constant 0 : index
    %11 = vector.load %arg4[%c0_6, %c0_7] : memref<1x128xf32, #tpu.memory_space<vmem>>, vector<1x128xf32>
    %12 = vector.broadcast %11 : vector<1x128xf32> to vector<32x128xf32>
    %13 = arith.addf %10, %12 : vector<32x128xf32>
    %cst_8 = arith.constant 5.000000e-01 : f32
    %14 = vector.broadcast %cst_8 : f32 to vector<32x128xf32>
    %15 = arith.mulf %14, %13 : vector<32x128xf32>
    %cst_9 = arith.constant 0.707106769 : f32
    %16 = vector.broadcast %cst_9 : f32 to vector<32x128xf32>
    %17 = arith.mulf %13, %16 : vector<32x128xf32>
    %cst_10 = arith.constant 0.000000e+00 : f32
    %18 = vector.broadcast %cst_10 : f32 to vector<32x128xf32>
    %19 = arith.cmpf oge, %17, %18 : vector<32x128xf32>
    %cst_11 = arith.constant 1.000000e+00 : f32
    %cst_12 = arith.constant -1.000000e+00 : f32
    %20 = vector.broadcast %cst_11 : f32 to vector<32x128xf32>
    %21 = vector.broadcast %cst_12 : f32 to vector<32x128xf32>
    %22 = arith.select %19, %20, %21 : vector<32x128xi1>, vector<32x128xf32>
    %23 = math.absf %17 : vector<32x128xf32>
    %cst_13 = arith.constant 0.327591091 : f32
    %24 = vector.broadcast %cst_13 : f32 to vector<32x128xf32>
    %25 = arith.mulf %24, %23 : vector<32x128xf32>
    %cst_14 = arith.constant 1.000000e+00 : f32
    %26 = vector.broadcast %cst_14 : f32 to vector<32x128xf32>
    %27 = arith.addf %26, %25 : vector<32x128xf32>
    %28 = tpu.reciprocal %27 {approx = true} : vector<32x128xf32> -> vector<32x128xf32>
    %cst_15 = arith.constant 1.06140542 : f32
    %29 = vector.broadcast %cst_15 : f32 to vector<32x128xf32>
    %30 = arith.mulf %29, %28 : vector<32x128xf32>
    %cst_16 = arith.constant -1.45315206 : f32
    %31 = vector.broadcast %cst_16 : f32 to vector<32x128xf32>
    %32 = arith.addf %30, %31 : vector<32x128xf32>
    %33 = arith.mulf %32, %28 : vector<32x128xf32>
    %cst_17 = arith.constant 1.42141378 : f32
    %34 = vector.broadcast %cst_17 : f32 to vector<32x128xf32>
    %35 = arith.addf %33, %34 : vector<32x128xf32>
    %36 = arith.mulf %35, %28 : vector<32x128xf32>
    %cst_18 = arith.constant -0.284496725 : f32
    %37 = vector.broadcast %cst_18 : f32 to vector<32x128xf32>
    %38 = arith.addf %36, %37 : vector<32x128xf32>
    %39 = arith.mulf %38, %28 : vector<32x128xf32>
    %cst_19 = arith.constant 0.254829586 : f32
    %40 = vector.broadcast %cst_19 : f32 to vector<32x128xf32>
    %41 = arith.addf %39, %40 : vector<32x128xf32>
    %42 = arith.mulf %41, %28 : vector<32x128xf32>
    %cst_20 = arith.constant 0.000000e+00 : f32
    %43 = vector.broadcast %cst_20 : f32 to vector<32x128xf32>
    %44 = arith.subf %43, %23 : vector<32x128xf32>
    %45 = arith.mulf %44, %23 : vector<32x128xf32>
    %46 = math.exp %45 : vector<32x128xf32>
    %47 = arith.mulf %42, %46 : vector<32x128xf32>
    %cst_21 = arith.constant 1.000000e+00 : f32
    %48 = vector.broadcast %cst_21 : f32 to vector<32x128xf32>
    %49 = arith.subf %48, %47 : vector<32x128xf32>
    %50 = arith.mulf %22, %49 : vector<32x128xf32>
    %cst_22 = arith.constant 1.000000e+00 : f32
    %51 = vector.broadcast %cst_22 : f32 to vector<32x128xf32>
    %52 = arith.addf %51, %50 : vector<32x128xf32>
    %53 = arith.mulf %15, %52 : vector<32x128xf32>
    %c0_23 = arith.constant 0 : index
    %c0_24 = arith.constant 0 : index
    %54 = vector.load %arg5[%c0_23, %c0_24] : memref<96x32xbf16, #tpu.memory_space<vmem>>, vector<96x32xbf16>
    %55 = arith.truncf %53 : vector<32x128xf32> to vector<32x128xbf16>
    %cst_25 = arith.constant dense<0.000000e+00> : vector<96x128xf32>
    %56 = tpu.matmul %54, %55, %cst_25 {dimension_numbers = #tpu.dot_dimension_numbers<[1], [0], [0], [1], [0, 0, 1, 1], [], []>} : vector<96x32xbf16>, vector<32x128xbf16>, vector<96x128xf32> -> vector<96x128xf32>
    %57 = vector.extract_strided_slice %56 {offsets = [0, 0], sizes = [32, 128], strides = [1, 1]} : vector<96x128xf32> to vector<32x128xf32>
    %58 = vector.extract_strided_slice %56 {offsets = [32, 0], sizes = [32, 128], strides = [1, 1]} : vector<96x128xf32> to vector<32x128xf32>
    %59 = vector.extract_strided_slice %56 {offsets = [64, 0], sizes = [32, 128], strides = [1, 1]} : vector<96x128xf32> to vector<32x128xf32>
    %60 = tpu.concatenate %57, %58, %59 in 1 : vector<32x128xf32>, vector<32x128xf32>, vector<32x128xf32> -> vector<32x384xf32>
    %61 = arith.truncf %60 : vector<32x384xf32> to vector<32x384xbf16>
    %c0_26 = arith.constant 0 : index
    %c0_27 = arith.constant 0 : index
    %62 = vector.load %arg6[%c0_26, %c0_27] : memref<384x128xbf16, #tpu.memory_space<vmem>>, vector<384x128xbf16>
    %cst_28 = arith.constant dense<0.000000e+00> : vector<32x128xf32>
    %63 = tpu.matmul %61, %62, %cst_28 {dimension_numbers = #tpu.dot_dimension_numbers<[1], [0], [0], [1], [0, 0, 1, 1], [], []>} : vector<32x384xbf16>, vector<384x128xbf16>, vector<32x128xf32> -> vector<32x128xf32>
    %c0_29 = arith.constant 0 : index
    %c0_30 = arith.constant 0 : index
    %64 = vector.load %arg7[%c0_29, %c0_30] : memref<1x128xf32, #tpu.memory_space<vmem>>, vector<1x128xf32>
    %65 = vector.broadcast %64 : vector<1x128xf32> to vector<32x128xf32>
    %66 = arith.addf %63, %65 : vector<32x128xf32>
    %cst_31 = arith.constant 5.000000e-01 : f32
    %67 = vector.broadcast %cst_31 : f32 to vector<32x128xf32>
    %68 = arith.mulf %67, %66 : vector<32x128xf32>
    %cst_32 = arith.constant 0.707106769 : f32
    %69 = vector.broadcast %cst_32 : f32 to vector<32x128xf32>
    %70 = arith.mulf %66, %69 : vector<32x128xf32>
    %cst_33 = arith.constant 0.000000e+00 : f32
    %71 = vector.broadcast %cst_33 : f32 to vector<32x128xf32>
    %72 = arith.cmpf oge, %70, %71 : vector<32x128xf32>
    %cst_34 = arith.constant 1.000000e+00 : f32
    %cst_35 = arith.constant -1.000000e+00 : f32
    %73 = vector.broadcast %cst_34 : f32 to vector<32x128xf32>
    %74 = vector.broadcast %cst_35 : f32 to vector<32x128xf32>
    %75 = arith.select %72, %73, %74 : vector<32x128xi1>, vector<32x128xf32>
    %76 = math.absf %70 : vector<32x128xf32>
    %cst_36 = arith.constant 0.327591091 : f32
    %77 = vector.broadcast %cst_36 : f32 to vector<32x128xf32>
    %78 = arith.mulf %77, %76 : vector<32x128xf32>
    %cst_37 = arith.constant 1.000000e+00 : f32
    %79 = vector.broadcast %cst_37 : f32 to vector<32x128xf32>
    %80 = arith.addf %79, %78 : vector<32x128xf32>
    %81 = tpu.reciprocal %80 {approx = true} : vector<32x128xf32> -> vector<32x128xf32>
    %cst_38 = arith.constant 1.06140542 : f32
    %82 = vector.broadcast %cst_38 : f32 to vector<32x128xf32>
    %83 = arith.mulf %82, %81 : vector<32x128xf32>
    %cst_39 = arith.constant -1.45315206 : f32
    %84 = vector.broadcast %cst_39 : f32 to vector<32x128xf32>
    %85 = arith.addf %83, %84 : vector<32x128xf32>
    %86 = arith.mulf %85, %81 : vector<32x128xf32>
    %cst_40 = arith.constant 1.42141378 : f32
    %87 = vector.broadcast %cst_40 : f32 to vector<32x128xf32>
    %88 = arith.addf %86, %87 : vector<32x128xf32>
    %89 = arith.mulf %88, %81 : vector<32x128xf32>
    %cst_41 = arith.constant -0.284496725 : f32
    %90 = vector.broadcast %cst_41 : f32 to vector<32x128xf32>
    %91 = arith.addf %89, %90 : vector<32x128xf32>
    %92 = arith.mulf %91, %81 : vector<32x128xf32>
    %cst_42 = arith.constant 0.254829586 : f32
    %93 = vector.broadcast %cst_42 : f32 to vector<32x128xf32>
    %94 = arith.addf %92, %93 : vector<32x128xf32>
    %95 = arith.mulf %94, %81 : vector<32x128xf32>
    %cst_43 = arith.constant 0.000000e+00 : f32
    %96 = vector.broadcast %cst_43 : f32 to vector<32x128xf32>
    %97 = arith.subf %96, %76 : vector<32x128xf32>
    %98 = arith.mulf %97, %76 : vector<32x128xf32>
    %99 = math.exp %98 : vector<32x128xf32>
    %100 = arith.mulf %95, %99 : vector<32x128xf32>
    %cst_44 = arith.constant 1.000000e+00 : f32
    %101 = vector.broadcast %cst_44 : f32 to vector<32x128xf32>
    %102 = arith.subf %101, %100 : vector<32x128xf32>
    %103 = arith.mulf %75, %102 : vector<32x128xf32>
    %cst_45 = arith.constant 1.000000e+00 : f32
    %104 = vector.broadcast %cst_45 : f32 to vector<32x128xf32>
    %105 = arith.addf %104, %103 : vector<32x128xf32>
    %106 = arith.mulf %68, %105 : vector<32x128xf32>
    %c0_46 = arith.constant 0 : index
    %c0_47 = arith.constant 0 : index
    %107 = vector.load %arg8[%c0_46, %c0_47] : memref<48x32xbf16, #tpu.memory_space<vmem>>, vector<48x32xbf16>
    %108 = arith.truncf %106 : vector<32x128xf32> to vector<32x128xbf16>
    %cst_48 = arith.constant dense<0.000000e+00> : vector<48x128xf32>
    %109 = tpu.matmul %107, %108, %cst_48 {dimension_numbers = #tpu.dot_dimension_numbers<[1], [0], [0], [1], [0, 0, 1, 1], [], []>} : vector<48x32xbf16>, vector<32x128xbf16>, vector<48x128xf32> -> vector<48x128xf32>
    %110 = vector.extract_strided_slice %109 {offsets = [0, 0], sizes = [16, 128], strides = [1, 1]} : vector<48x128xf32> to vector<16x128xf32>
    %111 = vector.extract_strided_slice %109 {offsets = [16, 0], sizes = [16, 128], strides = [1, 1]} : vector<48x128xf32> to vector<16x128xf32>
    %112 = vector.extract_strided_slice %109 {offsets = [32, 0], sizes = [16, 128], strides = [1, 1]} : vector<48x128xf32> to vector<16x128xf32>
    %113 = tpu.concatenate %110, %111, %112 in 1 : vector<16x128xf32>, vector<16x128xf32>, vector<16x128xf32> -> vector<16x384xf32>
    %114 = arith.truncf %113 : vector<16x384xf32> to vector<16x384xbf16>
    %c0_49 = arith.constant 0 : index
    %c0_50 = arith.constant 0 : index
    %115 = vector.load %arg9[%c0_49, %c0_50] : memref<384x128xbf16, #tpu.memory_space<vmem>>, vector<384x128xbf16>
    %cst_51 = arith.constant dense<0.000000e+00> : vector<16x128xf32>
    %116 = tpu.matmul %114, %115, %cst_51 {dimension_numbers = #tpu.dot_dimension_numbers<[1], [0], [0], [1], [0, 0, 1, 1], [], []>} : vector<16x384xbf16>, vector<384x128xbf16>, vector<16x128xf32> -> vector<16x128xf32>
    %c0_52 = arith.constant 0 : index
    %c0_53 = arith.constant 0 : index
    %117 = vector.load %arg10[%c0_52, %c0_53] : memref<1x128xf32, #tpu.memory_space<vmem>>, vector<1x128xf32>
    %118 = vector.broadcast %117 : vector<1x128xf32> to vector<16x128xf32>
    %119 = arith.addf %116, %118 : vector<16x128xf32>
    %cst_54 = arith.constant 5.000000e-01 : f32
    %120 = vector.broadcast %cst_54 : f32 to vector<16x128xf32>
    %121 = arith.mulf %120, %119 : vector<16x128xf32>
    %cst_55 = arith.constant 0.707106769 : f32
    %122 = vector.broadcast %cst_55 : f32 to vector<16x128xf32>
    %123 = arith.mulf %119, %122 : vector<16x128xf32>
    %cst_56 = arith.constant 0.000000e+00 : f32
    %124 = vector.broadcast %cst_56 : f32 to vector<16x128xf32>
    %125 = arith.cmpf oge, %123, %124 : vector<16x128xf32>
    %cst_57 = arith.constant 1.000000e+00 : f32
    %cst_58 = arith.constant -1.000000e+00 : f32
    %126 = vector.broadcast %cst_57 : f32 to vector<16x128xf32>
    %127 = vector.broadcast %cst_58 : f32 to vector<16x128xf32>
    %128 = arith.select %125, %126, %127 : vector<16x128xi1>, vector<16x128xf32>
    %129 = math.absf %123 : vector<16x128xf32>
    %cst_59 = arith.constant 0.327591091 : f32
    %130 = vector.broadcast %cst_59 : f32 to vector<16x128xf32>
    %131 = arith.mulf %130, %129 : vector<16x128xf32>
    %cst_60 = arith.constant 1.000000e+00 : f32
    %132 = vector.broadcast %cst_60 : f32 to vector<16x128xf32>
    %133 = arith.addf %132, %131 : vector<16x128xf32>
    %134 = tpu.reciprocal %133 {approx = true} : vector<16x128xf32> -> vector<16x128xf32>
    %cst_61 = arith.constant 1.06140542 : f32
    %135 = vector.broadcast %cst_61 : f32 to vector<16x128xf32>
    %136 = arith.mulf %135, %134 : vector<16x128xf32>
    %cst_62 = arith.constant -1.45315206 : f32
    %137 = vector.broadcast %cst_62 : f32 to vector<16x128xf32>
    %138 = arith.addf %136, %137 : vector<16x128xf32>
    %139 = arith.mulf %138, %134 : vector<16x128xf32>
    %cst_63 = arith.constant 1.42141378 : f32
    %140 = vector.broadcast %cst_63 : f32 to vector<16x128xf32>
    %141 = arith.addf %139, %140 : vector<16x128xf32>
    %142 = arith.mulf %141, %134 : vector<16x128xf32>
    %cst_64 = arith.constant -0.284496725 : f32
    %143 = vector.broadcast %cst_64 : f32 to vector<16x128xf32>
    %144 = arith.addf %142, %143 : vector<16x128xf32>
    %145 = arith.mulf %144, %134 : vector<16x128xf32>
    %cst_65 = arith.constant 0.254829586 : f32
    %146 = vector.broadcast %cst_65 : f32 to vector<16x128xf32>
    %147 = arith.addf %145, %146 : vector<16x128xf32>
    %148 = arith.mulf %147, %134 : vector<16x128xf32>
    %cst_66 = arith.constant 0.000000e+00 : f32
    %149 = vector.broadcast %cst_66 : f32 to vector<16x128xf32>
    %150 = arith.subf %149, %129 : vector<16x128xf32>
    %151 = arith.mulf %150, %129 : vector<16x128xf32>
    %152 = math.exp %151 : vector<16x128xf32>
    %153 = arith.mulf %148, %152 : vector<16x128xf32>
    %cst_67 = arith.constant 1.000000e+00 : f32
    %154 = vector.broadcast %cst_67 : f32 to vector<16x128xf32>
    %155 = arith.subf %154, %153 : vector<16x128xf32>
    %156 = arith.mulf %128, %155 : vector<16x128xf32>
    %cst_68 = arith.constant 1.000000e+00 : f32
    %157 = vector.broadcast %cst_68 : f32 to vector<16x128xf32>
    %158 = arith.addf %157, %156 : vector<16x128xf32>
    %159 = arith.mulf %121, %158 : vector<16x128xf32>
    %c0_69 = arith.constant 0 : index
    %c0_70 = arith.constant 0 : index
    %160 = vector.load %arg11[%c0_69, %c0_70] : memref<48x16xbf16, #tpu.memory_space<vmem>>, vector<48x16xbf16>
    %161 = arith.truncf %159 : vector<16x128xf32> to vector<16x128xbf16>
    %cst_71 = arith.constant dense<0.000000e+00> : vector<48x128xf32>
    %162 = tpu.matmul %160, %161, %cst_71 {dimension_numbers = #tpu.dot_dimension_numbers<[1], [0], [0], [1], [0, 0, 1, 1], [], []>} : vector<48x16xbf16>, vector<16x128xbf16>, vector<48x128xf32> -> vector<48x128xf32>
    %163 = vector.extract_strided_slice %162 {offsets = [0, 0], sizes = [16, 128], strides = [1, 1]} : vector<48x128xf32> to vector<16x128xf32>
    %164 = vector.extract_strided_slice %162 {offsets = [16, 0], sizes = [16, 128], strides = [1, 1]} : vector<48x128xf32> to vector<16x128xf32>
    %165 = vector.extract_strided_slice %162 {offsets = [32, 0], sizes = [16, 128], strides = [1, 1]} : vector<48x128xf32> to vector<16x128xf32>
    %166 = tpu.concatenate %163, %164, %165 in 1 : vector<16x128xf32>, vector<16x128xf32>, vector<16x128xf32> -> vector<16x384xf32>
    %167 = arith.truncf %166 : vector<16x384xf32> to vector<16x384xbf16>
    %c0_72 = arith.constant 0 : index
    %c0_73 = arith.constant 0 : index
    %168 = vector.load %arg12[%c0_72, %c0_73] : memref<384x128xbf16, #tpu.memory_space<vmem>>, vector<384x128xbf16>
    %cst_74 = arith.constant dense<0.000000e+00> : vector<16x128xf32>
    %169 = tpu.matmul %167, %168, %cst_74 {dimension_numbers = #tpu.dot_dimension_numbers<[1], [0], [0], [1], [0, 0, 1, 1], [], []>} : vector<16x384xbf16>, vector<384x128xbf16>, vector<16x128xf32> -> vector<16x128xf32>
    %c0_75 = arith.constant 0 : index
    %c0_76 = arith.constant 0 : index
    %170 = vector.load %arg13[%c0_75, %c0_76] : memref<1x128xf32, #tpu.memory_space<vmem>>, vector<1x128xf32>
    %171 = vector.broadcast %170 : vector<1x128xf32> to vector<16x128xf32>
    %172 = arith.addf %169, %171 : vector<16x128xf32>
    %cst_77 = arith.constant 5.000000e-01 : f32
    %173 = vector.broadcast %cst_77 : f32 to vector<16x128xf32>
    %174 = arith.mulf %173, %172 : vector<16x128xf32>
    %cst_78 = arith.constant 0.707106769 : f32
    %175 = vector.broadcast %cst_78 : f32 to vector<16x128xf32>
    %176 = arith.mulf %172, %175 : vector<16x128xf32>
    %cst_79 = arith.constant 0.000000e+00 : f32
    %177 = vector.broadcast %cst_79 : f32 to vector<16x128xf32>
    %178 = arith.cmpf oge, %176, %177 : vector<16x128xf32>
    %cst_80 = arith.constant 1.000000e+00 : f32
    %cst_81 = arith.constant -1.000000e+00 : f32
    %179 = vector.broadcast %cst_80 : f32 to vector<16x128xf32>
    %180 = vector.broadcast %cst_81 : f32 to vector<16x128xf32>
    %181 = arith.select %178, %179, %180 : vector<16x128xi1>, vector<16x128xf32>
    %182 = math.absf %176 : vector<16x128xf32>
    %cst_82 = arith.constant 0.327591091 : f32
    %183 = vector.broadcast %cst_82 : f32 to vector<16x128xf32>
    %184 = arith.mulf %183, %182 : vector<16x128xf32>
    %cst_83 = arith.constant 1.000000e+00 : f32
    %185 = vector.broadcast %cst_83 : f32 to vector<16x128xf32>
    %186 = arith.addf %185, %184 : vector<16x128xf32>
    %187 = tpu.reciprocal %186 {approx = true} : vector<16x128xf32> -> vector<16x128xf32>
    %cst_84 = arith.constant 1.06140542 : f32
    %188 = vector.broadcast %cst_84 : f32 to vector<16x128xf32>
    %189 = arith.mulf %188, %187 : vector<16x128xf32>
    %cst_85 = arith.constant -1.45315206 : f32
    %190 = vector.broadcast %cst_85 : f32 to vector<16x128xf32>
    %191 = arith.addf %189, %190 : vector<16x128xf32>
    %192 = arith.mulf %191, %187 : vector<16x128xf32>
    %cst_86 = arith.constant 1.42141378 : f32
    %193 = vector.broadcast %cst_86 : f32 to vector<16x128xf32>
    %194 = arith.addf %192, %193 : vector<16x128xf32>
    %195 = arith.mulf %194, %187 : vector<16x128xf32>
    %cst_87 = arith.constant -0.284496725 : f32
    %196 = vector.broadcast %cst_87 : f32 to vector<16x128xf32>
    %197 = arith.addf %195, %196 : vector<16x128xf32>
    %198 = arith.mulf %197, %187 : vector<16x128xf32>
    %cst_88 = arith.constant 0.254829586 : f32
    %199 = vector.broadcast %cst_88 : f32 to vector<16x128xf32>
    %200 = arith.addf %198, %199 : vector<16x128xf32>
    %201 = arith.mulf %200, %187 : vector<16x128xf32>
    %cst_89 = arith.constant 0.000000e+00 : f32
    %202 = vector.broadcast %cst_89 : f32 to vector<16x128xf32>
    %203 = arith.subf %202, %182 : vector<16x128xf32>
    %204 = arith.mulf %203, %182 : vector<16x128xf32>
    %205 = math.exp %204 : vector<16x128xf32>
    %206 = arith.mulf %201, %205 : vector<16x128xf32>
    %cst_90 = arith.constant 1.000000e+00 : f32
    %207 = vector.broadcast %cst_90 : f32 to vector<16x128xf32>
    %208 = arith.subf %207, %206 : vector<16x128xf32>
    %209 = arith.mulf %181, %208 : vector<16x128xf32>
    %cst_91 = arith.constant 1.000000e+00 : f32
    %210 = vector.broadcast %cst_91 : f32 to vector<16x128xf32>
    %211 = arith.addf %210, %209 : vector<16x128xf32>
    %212 = arith.mulf %174, %211 : vector<16x128xf32>
    %c0_92 = arith.constant 0 : index
    %c0_93 = arith.constant 0 : index
    %213 = vector.load %arg14[%c0_92, %c0_93] : memref<24x16xbf16, #tpu.memory_space<vmem>>, vector<24x16xbf16>
    %214 = arith.truncf %212 : vector<16x128xf32> to vector<16x128xbf16>
    %cst_94 = arith.constant dense<0.000000e+00> : vector<24x128xf32>
    %215 = tpu.matmul %213, %214, %cst_94 {dimension_numbers = #tpu.dot_dimension_numbers<[1], [0], [0], [1], [0, 0, 1, 1], [], []>} : vector<24x16xbf16>, vector<16x128xbf16>, vector<24x128xf32> -> vector<24x128xf32>
    %216 = vector.extract_strided_slice %215 {offsets = [0, 0], sizes = [8, 128], strides = [1, 1]} : vector<24x128xf32> to vector<8x128xf32>
    %217 = vector.extract_strided_slice %215 {offsets = [8, 0], sizes = [8, 128], strides = [1, 1]} : vector<24x128xf32> to vector<8x128xf32>
    %218 = vector.extract_strided_slice %215 {offsets = [16, 0], sizes = [8, 128], strides = [1, 1]} : vector<24x128xf32> to vector<8x128xf32>
    %219 = tpu.concatenate %216, %217, %218 in 1 : vector<8x128xf32>, vector<8x128xf32>, vector<8x128xf32> -> vector<8x384xf32>
    %220 = arith.truncf %219 : vector<8x384xf32> to vector<8x384xbf16>
    %c0_95 = arith.constant 0 : index
    %c0_96 = arith.constant 0 : index
    %221 = vector.load %arg15[%c0_95, %c0_96] : memref<384x128xbf16, #tpu.memory_space<vmem>>, vector<384x128xbf16>
    %cst_97 = arith.constant dense<0.000000e+00> : vector<8x128xf32>
    %222 = tpu.matmul %220, %221, %cst_97 {dimension_numbers = #tpu.dot_dimension_numbers<[1], [0], [0], [1], [0, 0, 1, 1], [], []>} : vector<8x384xbf16>, vector<384x128xbf16>, vector<8x128xf32> -> vector<8x128xf32>
    %c0_98 = arith.constant 0 : index
    %c0_99 = arith.constant 0 : index
    %223 = vector.load %arg16[%c0_98, %c0_99] : memref<1x128xf32, #tpu.memory_space<vmem>>, vector<1x128xf32>
    %224 = vector.broadcast %223 : vector<1x128xf32> to vector<8x128xf32>
    %225 = arith.addf %222, %224 : vector<8x128xf32>
    %cst_100 = arith.constant 5.000000e-01 : f32
    %226 = vector.broadcast %cst_100 : f32 to vector<8x128xf32>
    %227 = arith.mulf %226, %225 : vector<8x128xf32>
    %cst_101 = arith.constant 0.707106769 : f32
    %228 = vector.broadcast %cst_101 : f32 to vector<8x128xf32>
    %229 = arith.mulf %225, %228 : vector<8x128xf32>
    %cst_102 = arith.constant 0.000000e+00 : f32
    %230 = vector.broadcast %cst_102 : f32 to vector<8x128xf32>
    %231 = arith.cmpf oge, %229, %230 : vector<8x128xf32>
    %cst_103 = arith.constant 1.000000e+00 : f32
    %cst_104 = arith.constant -1.000000e+00 : f32
    %232 = vector.broadcast %cst_103 : f32 to vector<8x128xf32>
    %233 = vector.broadcast %cst_104 : f32 to vector<8x128xf32>
    %234 = arith.select %231, %232, %233 : vector<8x128xi1>, vector<8x128xf32>
    %235 = math.absf %229 : vector<8x128xf32>
    %cst_105 = arith.constant 0.327591091 : f32
    %236 = vector.broadcast %cst_105 : f32 to vector<8x128xf32>
    %237 = arith.mulf %236, %235 : vector<8x128xf32>
    %cst_106 = arith.constant 1.000000e+00 : f32
    %238 = vector.broadcast %cst_106 : f32 to vector<8x128xf32>
    %239 = arith.addf %238, %237 : vector<8x128xf32>
    %240 = tpu.reciprocal %239 {approx = true} : vector<8x128xf32> -> vector<8x128xf32>
    %cst_107 = arith.constant 1.06140542 : f32
    %241 = vector.broadcast %cst_107 : f32 to vector<8x128xf32>
    %242 = arith.mulf %241, %240 : vector<8x128xf32>
    %cst_108 = arith.constant -1.45315206 : f32
    %243 = vector.broadcast %cst_108 : f32 to vector<8x128xf32>
    %244 = arith.addf %242, %243 : vector<8x128xf32>
    %245 = arith.mulf %244, %240 : vector<8x128xf32>
    %cst_109 = arith.constant 1.42141378 : f32
    %246 = vector.broadcast %cst_109 : f32 to vector<8x128xf32>
    %247 = arith.addf %245, %246 : vector<8x128xf32>
    %248 = arith.mulf %247, %240 : vector<8x128xf32>
    %cst_110 = arith.constant -0.284496725 : f32
    %249 = vector.broadcast %cst_110 : f32 to vector<8x128xf32>
    %250 = arith.addf %248, %249 : vector<8x128xf32>
    %251 = arith.mulf %250, %240 : vector<8x128xf32>
    %cst_111 = arith.constant 0.254829586 : f32
    %252 = vector.broadcast %cst_111 : f32 to vector<8x128xf32>
    %253 = arith.addf %251, %252 : vector<8x128xf32>
    %254 = arith.mulf %253, %240 : vector<8x128xf32>
    %cst_112 = arith.constant 0.000000e+00 : f32
    %255 = vector.broadcast %cst_112 : f32 to vector<8x128xf32>
    %256 = arith.subf %255, %235 : vector<8x128xf32>
    %257 = arith.mulf %256, %235 : vector<8x128xf32>
    %258 = math.exp %257 : vector<8x128xf32>
    %259 = arith.mulf %254, %258 : vector<8x128xf32>
    %cst_113 = arith.constant 1.000000e+00 : f32
    %260 = vector.broadcast %cst_113 : f32 to vector<8x128xf32>
    %261 = arith.subf %260, %259 : vector<8x128xf32>
    %262 = arith.mulf %234, %261 : vector<8x128xf32>
    %cst_114 = arith.constant 1.000000e+00 : f32
    %263 = vector.broadcast %cst_114 : f32 to vector<8x128xf32>
    %264 = arith.addf %263, %262 : vector<8x128xf32>
    %265 = arith.mulf %227, %264 : vector<8x128xf32>
    %c0_115 = arith.constant 0 : index
    %c0_116 = arith.constant 0 : index
    %266 = vector.load %arg17[%c0_115, %c0_116] : memref<32x8xbf16, #tpu.memory_space<vmem>>, vector<32x8xbf16>
    %267 = arith.truncf %265 : vector<8x128xf32> to vector<8x128xbf16>
    %cst_117 = arith.constant dense<0.000000e+00> : vector<32x128xf32>
    %268 = tpu.matmul %266, %267, %cst_117 {dimension_numbers = #tpu.dot_dimension_numbers<[1], [0], [0], [1], [0, 0, 1, 1], [], []>} : vector<32x8xbf16>, vector<8x128xbf16>, vector<32x128xf32> -> vector<32x128xf32>
    %269 = vector.extract_strided_slice %268 {offsets = [0, 0], sizes = [8, 128], strides = [1, 1]} : vector<32x128xf32> to vector<8x128xf32>
    %270 = vector.extract_strided_slice %268 {offsets = [8, 0], sizes = [8, 128], strides = [1, 1]} : vector<32x128xf32> to vector<8x128xf32>
    %271 = vector.extract_strided_slice %268 {offsets = [16, 0], sizes = [8, 128], strides = [1, 1]} : vector<32x128xf32> to vector<8x128xf32>
    %272 = vector.extract_strided_slice %268 {offsets = [24, 0], sizes = [8, 128], strides = [1, 1]} : vector<32x128xf32> to vector<8x128xf32>
    %273 = tpu.concatenate %269, %270, %271, %272 in 1 : vector<8x128xf32>, vector<8x128xf32>, vector<8x128xf32>, vector<8x128xf32> -> vector<8x512xf32>
    %274 = arith.truncf %273 : vector<8x512xf32> to vector<8x512xbf16>
    %c0_118 = arith.constant 0 : index
    %c0_119 = arith.constant 0 : index
    %275 = vector.load %arg18[%c0_118, %c0_119] : memref<512x32xbf16, #tpu.memory_space<vmem>>, vector<512x32xbf16>
    %cst_120 = arith.constant dense<0.000000e+00> : vector<8x32xf32>
    %276 = tpu.matmul %274, %275, %cst_120 {dimension_numbers = #tpu.dot_dimension_numbers<[1], [0], [0], [1], [0, 0, 1, 1], [], []>} : vector<8x512xbf16>, vector<512x32xbf16>, vector<8x32xf32> -> vector<8x32xf32>
    %277 = vector.extract_strided_slice %276 {offsets = [0, 0], sizes = [2, 32], strides = [1, 1]} : vector<8x32xf32> to vector<2x32xf32>
    %c0_121 = arith.constant 0 : index
    %c0_122 = arith.constant 0 : index
    %278 = vector.load %arg19[%c0_121, %c0_122] : memref<1x32xf32, #tpu.memory_space<vmem>>, vector<1x32xf32>
    %279 = vector.broadcast %278 : vector<1x32xf32> to vector<2x32xf32>
    %280 = arith.addf %277, %279 : vector<2x32xf32>
    %c0_123 = arith.constant 0 : index
    %c0_124 = arith.constant 0 : index
    %281 = vector.load %arg20[%c0_123, %c0_124] : memref<2x32xf32, #tpu.memory_space<vmem>>, vector<2x32xf32>
    tpu.vector_store %arg20[%c0_123, %c0_124], %280 {strides = array<i32>} : memref<2x32xf32, #tpu.memory_space<vmem>>, vector<2x32xf32>,
    return
  }
  func.func @transform_0(%arg0: i32) -> (i32, i32) {
    %c0_i32 = arith.constant 0 : i32
    %c0_i32_0 = arith.constant 0 : i32
    %c0_i32_1 = arith.constant 0 : i32
    return %c0_i32, %c0_i32_0 : i32, i32
  }
  func.func @transform_1(%arg0: i32) -> (i32, i32) {
    %c0_i32 = arith.constant 0 : i32
    %c0_i32_0 = arith.constant 0 : i32
    %c0_i32_1 = arith.constant 0 : i32
    return %c0_i32, %c0_i32_0 : i32, i32
  }
  func.func @transform_2(%arg0: i32) -> (i32, i32) {
    %c0_i32 = arith.constant 0 : i32
    %c0_i32_0 = arith.constant 0 : i32
    %c0_i32_1 = arith.constant 0 : i32
    return %c0_i32, %c0_i32_0 : i32, i32
  }
  func.func @transform_3(%arg0: i32) -> (i32, i32) {
    %c0_i32 = arith.constant 0 : i32
    %c0_i32_0 = arith.constant 0 : i32
    %c0_i32_1 = arith.constant 0 : i32
    return %c0_i32, %c0_i32_0 : i32, i32
  }
  func.func @transform_4(%arg0: i32) -> (i32, i32) {
    %c0_i32 = arith.constant 0 : i32
    %c0_i32_0 = arith.constant 0 : i32
    %c0_i32_1 = arith.constant 0 : i32
    return %c0_i32, %c0_i32_0 : i32, i32
  }
  func.func @transform_5(%arg0: i32) -> (i32, i32) {
    %c0_i32 = arith.constant 0 : i32
    %c0_i32_0 = arith.constant 0 : i32
    %c0_i32_1 = arith.constant 0 : i32
    return %c0_i32, %c0_i32_0 : i32, i32
  }
  func.func @transform_6(%arg0: i32) -> (i32, i32) {
    %c0_i32 = arith.constant 0 : i32
    %c0_i32_0 = arith.constant 0 : i32
    %c0_i32_1 = arith.constant 0 : i32
    return %c0_i32, %c0_i32_0 : i32, i32
  }
  func.func @transform_7(%arg0: i32) -> (i32, i32) {
    %c0_i32 = arith.constant 0 : i32
    %c0_i32_0 = arith.constant 0 : i32
    %c0_i32_1 = arith.constant 0 : i32
    return %c0_i32, %c0_i32_0 : i32, i32
  }
  func.func @transform_8(%arg0: i32) -> (i32, i32) {
    %c0_i32 = arith.constant 0 : i32
    %c0_i32_0 = arith.constant 0 : i32
    %c0_i32_1 = arith.constant 0 : i32
    return %c0_i32, %c0_i32_0 : i32, i32
  }
  func.func @transform_9(%arg0: i32) -> (i32, i32) {
    %c0_i32 = arith.constant 0 : i32
    %c0_i32_0 = arith.constant 0 : i32
    %c0_i32_1 = arith.constant 0 : i32
    return %c0_i32, %c0_i32_0 : i32, i32
  }
  func.func @transform_10(%arg0: i32) -> (i32, i32) {
    %c0_i32 = arith.constant 0 : i32
    %c0_i32_0 = arith.constant 0 : i32
    %c0_i32_1 = arith.constant 0 : i32
    return %c0_i32, %c0_i32_0 : i32, i32
  }
  func.func @transform_11(%arg0: i32) -> (i32, i32) {
    %c0_i32 = arith.constant 0 : i32
    %c0_i32_0 = arith.constant 0 : i32
    %c0_i32_1 = arith.constant 0 : i32
    return %c0_i32, %c0_i32_0 : i32, i32
  }
  func.func @transform_12(%arg0: i32) -> (i32, i32) {
    %c0_i32 = arith.constant 0 : i32
    %c0_i32_0 = arith.constant 0 : i32
    %c0_i32_1 = arith.constant 0 : i32
    return %c0_i32, %c0_i32_0 : i32, i32
  }
  func.func @transform_13(%arg0: i32) -> (i32, i32) {
    %c0_i32 = arith.constant 0 : i32
    %c0_i32_0 = arith.constant 0 : i32
    %c0_i32_1 = arith.constant 0 : i32
    return %c0_i32, %c0_i32_0 : i32, i32
  }
  func.func @transform_14(%arg0: i32) -> (i32, i32) {
    %c0_i32 = arith.constant 0 : i32
    %c0_i32_0 = arith.constant 0 : i32
    %c0_i32_1 = arith.constant 0 : i32
    return %c0_i32, %c0_i32_0 : i32, i32
  }
  func.func @transform_15(%arg0: i32) -> (i32, i32) {
    %c0_i32 = arith.constant 0 : i32
    %c0_i32_0 = arith.constant 0 : i32
    %c0_i32_1 = arith.constant 0 : i32
    return %c0_i32, %c0_i32_0 : i32, i32
  }
  func.func @transform_16(%arg0: i32) -> (i32, i32) {
    %c0_i32 = arith.constant 0 : i32
    %c0_i32_0 = arith.constant 0 : i32
    %c0_i32_1 = arith.constant 0 : i32
    return %c0_i32, %c0_i32_0 : i32, i32
  }
  func.func @transform_17(%arg0: i32) -> (i32, i32) {
    %c0_i32 = arith.constant 0 : i32
    %c0_i32_0 = arith.constant 0 : i32
    %c0_i32_1 = arith.constant 0 : i32
    return %c0_i32, %c0_i32_0 : i32, i32
  }
  func.func @transform_18(%arg0: i32) -> (i32, i32) {
    %c0_i32 = arith.constant 0 : i32
    %c0_i32_0 = arith.constant 0 : i32
    %c0_i32_1 = arith.constant 0 : i32
    return %c0_i32, %c0_i32_0 : i32, i32
  }
  func.func @transform_19(%arg0: i32) -> (i32, i32) {
    %c0_i32 = arith.constant 0 : i32
    %c0_i32_0 = arith.constant 0 : i32
    %c0_i32_1 = arith.constant 0 : i32
    return %c0_i32, %c0_i32_0 : i32, i32
  }
}

</mosaic_0001>

<bundles_post_ra>
// kernel: encoder_forward.1
= control target key start
LH: loop header
LB: loop body
LE: loop exit
PB: predicated region body
PF: predicated region fallthrough
CT: control target
= control target key end

     0   :  { %s4544_s0 = inlined_call_operand.vmem [shape: f32[64,128], index: 0, kind: input, shape index: {}]   ;;  %s4545_s1 = inlined_call_operand.vmem [shape: bf16[96,64], index: 1, kind: input, shape index: {}]   ;;  %s4546_s2 = inlined_call_operand.vmem [shape: bf16[384,128], index: 2, kind: input, shape index: {}]   ;;  %s4547_s3 = inlined_call_operand.vmem [shape: f32[1,128], index: 3, kind: input, shape index: {}]   ;;  %s4548_s4 = inlined_call_operand.vmem [shape: bf16[96,32], index: 4, kind: input, shape index: {}]   ;;  %s4549_s5 = inlined_call_operand.vmem [shape: bf16[384,128], index: 5, kind: input, shape index: {}]   ;;  %s4550_s6 = inlined_call_operand.vmem [shape: f32[1,128], index: 6, kind: input, shape index: {}]   ;;  %s4551_s7 = inlined_call_operand.vmem [shape: bf16[48,32], index: 7, kind: input, shape index: {}]   ;;  %s4552_s8 = inlined_call_operand.vmem [shape: bf16[384,128], index: 8, kind: input, shape index: {}]   ;;  %s4553_s9 = inlined_call_operand.vmem [shape: f32[1,128], index: 9, kind: input, shape index: {}]   ;;  %s4554_s10 = inlined_call_operand.vmem [shape: bf16[48,16], index: 10, kind: input, shape index: {}]   ;;  %s4555_s11 = inlined_call_operand.vmem [shape: bf16[384,128], index: 11, kind: input, shape index: {}]   ;;  %s4556_s12 = inlined_call_operand.vmem [shape: f32[1,128], index: 12, kind: input, shape index: {}]   ;;  %s4557_s13 = inlined_call_operand.vmem [shape: bf16[24,16], index: 13, kind: input, shape index: {}]   ;;  %s4558_s14 = inlined_call_operand.vmem [shape: bf16[384,128], index: 14, kind: input, shape index: {}]   ;;  %s4559_s15 = inlined_call_operand.vmem [shape: f32[1,128], index: 15, kind: input, shape index: {}]   ;;  %s4560_s16 = inlined_call_operand.vmem [shape: bf16[32,8], index: 16, kind: input, shape index: {}]   ;;  %s4561_s17 = inlined_call_operand.vmem [shape: bf16[512,32], index: 17, kind: input, shape index: {}]   ;;  %s4562_s18 = inlined_call_operand.vmem [shape: f32[1,32], index: 18, kind: input, shape index: {}]   ;;  %s4563_s19 = inlined_call_operand.hbm [shape: f32[2,32], index: 19, kind: output, shape index: {}]  }
   0x1   :  { %4567 = sst [smem:[#allocation5_spill]] %s4544_s0 }
   0x2   :  { %4568 = sst [smem:[#allocation6_spill]] %s4545_s1 }
   0x3   :  { %4569 = sst [smem:[#allocation7_spill]] %s4546_s2 }
   0x4   :  { %4570 = sst [smem:[#allocation8_spill]] %s4547_s3 }
   0x5   :  { %s4571_s20 = sld [smem:[#allocation5_spill]]  ;;  %vm118_vm0 = vcmask 523264   ;;  %s4572_s0 = sld [smem:[#allocation6_spill]] }
   0x6   :  { %s4573_s24 = sld [smem:[#allocation7_spill]] }
   0xb   :  { %v64_v0 = vld [vmem:[%s4571_s20] sm:$0xff]  ;;  %v65_v1 = vld [vmem:[%s4571_s20 + $0x8] sm:$0xff]  ;;  %v66_v2 = vld [vmem:[%s4571_s20 + $0x10] sm:$0xff] }
   0xc   :  { %v84_v3 = vpack.c.bf16 %v65_v1, %v64_v0  ;;  %v67_v4 = vld [vmem:[%s4571_s20 + $0x18] sm:$0xff]  ;;  %v68_v6 = vld [vmem:[%s4571_s20 + $0x20] sm:$0xff]  ;;  %v69_v7 = vld [vmem:[%s4571_s20 + $0x28] sm:$0xff] }
   0xd   :  { %v85_v5 = vpack.c.bf16 %v67_v4, %v66_v2  ;;  %v3470_v8 = vld [vmem:[%s4572_s0] sm:$0xff]   ;;  %v86_v9 = vpack.c.bf16 %v69_v7, %v68_v6  ;;  %v70_v10 = vld [vmem:[%s4571_s20 + $0x30] sm:$0xff]  ;;  %v71_v11 = vld [vmem:[%s4571_s20 + $0x38] sm:$0xff] }
   0xe   :  { %3287 = vmatprep.subr.bf16.mxu0 %v84_v3  ;;  %3295 = vmatprep.mubr.msk.bf16.mxu0 %vm118_vm0, %v3470_v8  ;;  %v87_v12 = vpack.c.bf16 %v71_v11, %v70_v10  ;;  %v3476_v13 = vld [vmem:[%s4573_s24 + $0x40] sm:$0xff]   ;;  %v3478_v15 = vld [vmem:[%s4573_s24 + $0x48] sm:$0xff]   ;;  %v3480_v18 = vld [vmem:[%s4573_s24 + $0x50] sm:$0xff]  }
   0xf   :  { %3288 = vmatpush3.bf16.msra.mxu0 %v84_v3  ;;  %v3477_v14 = vld [vmem:[%s4573_s24] sm:$0xff]   ;;  %3051 = vmatprep.subr.bf16.mxu1 %v3476_v13  ;;  %v3479_v16 = vld [vmem:[%s4573_s24 + $0x8] sm:$0xff]   ;;  %v3472_v19 = vld [vmem:[%s4572_s0 + $0x10] sm:$0xff]  }
  0x10   :  { %3289 = vmatprep.subr.bf16.mxu0 %v85_v5  ;;  %3052 = vmatpush3.bf16.msra.mxu1 %v3477_v14  ;;  %v3471_v17 = vld [vmem:[%s4572_s0 + $0x8] sm:$0xff]   ;;  %v3481_v20 = vld [vmem:[%s4573_s24 + $0x80] sm:$0xff]   ;;  %v3482_v21 = vld [vmem:[%s4573_s24 + $0x10] sm:$0xff]  }
  0x11   :  { %3053 = vmatprep.subr.bf16.mxu1 %v3478_v15  ;;  %v3483_v22 = vld [vmem:[%s4573_s24 + $0x58] sm:$0xff]   ;;  %v3484_v23 = vld [vmem:[%s4573_s24 + $0x88] sm:$0xff]   ;;  %v3486_v25 = vld [vmem:[%s4573_s24 + $0x60] sm:$0xff]  }
  0x12   :  { %v3485_v24 = vld [vmem:[%s4573_s24 + $0x18] sm:$0xff]   ;;  %v3487_v26 = vld [vmem:[%s4573_s24 + $0x90] sm:$0xff]   ;;  %v3474_v28 = vld [vmem:[%s4572_s0 + $0x20] sm:$0xff]  }
  0x13   :  { %3290 = vmatpush3.bf16.msra.mxu0 %v85_v5  ;;  %v3473_v27 = vld [vmem:[%s4572_s0 + $0x18] sm:$0xff]   ;;  %v3475_v29 = vld [vmem:[%s4572_s0 + $0x28] sm:$0xff]   ;;  %v3488_v30 = vld [vmem:[%s4573_s24 + $0x20] sm:$0xff]  }
  0x14   :  { %3291 = vmatprep.subr.bf16.mxu0 %v86_v9  ;;  %3054 = vmatpush3.bf16.msra.mxu1 %v3479_v16  ;;  %v3489_v31 = vld [vmem:[%s4573_s24 + $0x68] sm:$0xff]   ;;  %v3490_v32 = vld [vmem:[%s4573_s24 + $0x98] sm:$0xff]   ;;  %v3492_v34 = vld [vmem:[%s4573_s24 + $0x70] sm:$0xff]  }
  0x15   :  { %3055 = vmatprep.subr.bf16.mxu1 %v3480_v18  ;;  %v3491_v33 = vld [vmem:[%s4573_s24 + $0x28] sm:$0xff]   ;;  %v3493_v35 = vld [vmem:[%s4573_s24 + $0xa0] sm:$0xff]   ;;  %v3494_v36 = vld [vmem:[%s4573_s24 + $0x30] sm:$0xff]  }
  0x16   :  { %v3495_v37 = vld [vmem:[%s4573_s24 + $0x78] sm:$0xff]   ;;  %v3496_v38 = vld [vmem:[%s4573_s24 + $0xa8] sm:$0xff]   ;;  %v3498_v40 = vld [vmem:[%s4573_s24 + $0xb0] sm:$0xff]  }
  0x17   :  { %3292 = vmatpush3.bf16.msra.mxu0 %v86_v9  ;;  %v3497_v39 = vld [vmem:[%s4573_s24 + $0x38] sm:$0xff]  }
  0x18   :  { %3293 = vmatprep.subr.bf16.mxu0 %v87_v12  ;;  %3056 = vmatpush3.bf16.msra.mxu1 %v3482_v21  ;;  %v3499_v41 = vld [vmem:[%s4573_s24 + $0xb8] sm:$0xff]  }
  0x19   :  { %3057 = vmatprep.subr.bf16.mxu1 %v3483_v22 }
  0x1b   :  { %3294 = vmatpush3.bf16.msra.mxu0 %v87_v12 }
  0x1c   :  { %3307 = vmatprep.subr.bf16.mxu0 %v3481_v20  ;;  %3058 = vmatpush3.bf16.msra.mxu1 %v3485_v24 }
  0x1d   :  { %3059 = vmatprep.subr.bf16.mxu1 %v3486_v25 }
  0x1e   :  { %3296 = vmatmul.mubr.msk.bf16.vlgmr.msra.gmra.mrb[0].mxu0 %vm118_vm0, %v3471_v17 }
  0x1f   :  { %3299 = vmatprep.mubr.msk.bf16.mxu0 %vm118_vm0, %v3472_v19  ;;  %3308 = vmatpush3.bf16.msra.mxu0 %v3481_v20 }
  0x20   :  { %3309 = vmatprep.subr.bf16.mxu0 %v3484_v23  ;;  %3060 = vmatpush3.bf16.msra.mxu1 %v3488_v30 }
  0x21   :  { %3061 = vmatprep.subr.bf16.mxu1 %v3489_v31 }
  0x23   :  { %3310 = vmatpush3.bf16.msra.mxu0 %v3484_v23 }
  0x24   :  { %3311 = vmatprep.subr.bf16.mxu0 %v3487_v26  ;;  %3062 = vmatpush3.bf16.msra.mxu1 %v3491_v33 }
  0x25   :  { %3063 = vmatprep.subr.bf16.mxu1 %v3492_v34 }
  0x26   :  { %3300 = vmatmul.mubr.msk.bf16.gmra.mrb[4].mxu0 %vm118_vm0, %v3473_v27 }
  0x27   :  { %3303 = vmatprep.mubr.msk.bf16.mxu0 %vm118_vm0, %v3474_v28  ;;  %3312 = vmatpush3.bf16.msra.mxu0 %v3487_v26 }
  0x28   :  { %3313 = vmatprep.subr.bf16.mxu0 %v3490_v32  ;;  %3064 = vmatpush3.bf16.msra.mxu1 %v3494_v36 }
  0x29   :  { %3065 = vmatprep.subr.bf16.mxu1 %v3495_v37 }
  0x2b   :  { %3314 = vmatpush3.bf16.msra.mxu0 %v3490_v32 }
  0x2c   :  { %3315 = vmatprep.subr.bf16.mxu0 %v3493_v35  ;;  %3066 = vmatpush3.bf16.msra.mxu1 %v3497_v39 }
  0x2e   :  { %3304 = vmatmul.mubr.msk.bf16.gmra.mrb[8].mxu0 %vm118_vm0, %v3475_v29 }
  0x2f   :  { %3316 = vmatpush3.bf16.msra.mxu0 %v3493_v35 }
  0x30   :  { %3317 = vmatprep.subr.bf16.mxu0 %v3496_v38 }
  0x33   :  { %3318 = vmatpush3.bf16.msra.mxu0 %v3496_v38 }
  0x34   :  { %3319 = vmatprep.subr.bf16.mxu0 %v3498_v40 }
  0x37   :  { %3320 = vmatpush3.bf16.msra.mxu0 %v3498_v40 }
  0x38   :  { %3321 = vmatprep.subr.bf16.mxu0 %v3499_v41 }
  0x3b   :  { %3322 = vmatpush3.bf16.msra.mxu0 %v3499_v41 }
  0x3c   :  { %24 = vsyncpa [#allocation3], 0  ;;  %v3500_v60 = vld [vmem:[%s4548_s4] sm:$0xff]   ;;  %vm669_vm1 = vcmask 261120   ;;  %v3508_v63 = vld [vmem:[%s4549_s5 + $0x48] sm:$0xff]   ;;  %s4574_s22 = sld [smem:[#allocation8_spill]] }
  0x3d   :  { %v3506_v61 = vld [vmem:[%s4549_s5 + $0x40] sm:$0xff]   ;;  %v3509_v0 = vld [vmem:[%s4549_s5 + $0x8] sm:$0xff]   ;;  %v3510_v1 = vld [vmem:[%s4549_s5 + $0x50] sm:$0xff]   ;;  %vm3722_vm6 = vmmov 0   ;;  %vm1623_vm13 = vcmask 130048   ;;  %vm2415_vm0 = vcmask 64512  }
  0x3e   :  { %v3507_v62 = vld [vmem:[%s4549_s5] sm:$0xff]   ;;  %3097 = vmatprep.subr.bf16.mxu0 %v3506_v61  ;;  %v3512_v2 = vld [vmem:[%s4549_s5 + $0x10] sm:$0xff]   ;;  %v3513_v3 = vld [vmem:[%s4549_s5 + $0x58] sm:$0xff]  }
  0x3f   :  { %v3515_v4 = vld [vmem:[%s4549_s5 + $0x18] sm:$0xff]   ;;  %v3516_v5 = vld [vmem:[%s4549_s5 + $0x60] sm:$0xff]  }
  0x40   :  { %v3518_v6 = vld [vmem:[%s4549_s5 + $0x20] sm:$0xff]  }
  0x42   :  { %v2851_v13 = vld [vmem:[%s4574_s22] ss:$0 sm:$0xff] }
  0xf1   :  { %v3297_v42 = vpop.f32.mrb[0].mxu0 }
  0xf2   :  { %v171_v43 = vpop.f32.mrb[1].mxu0 }
  0xf3   :  { %v3298_v44 = vpop.f32.mrb[2].mxu0 }
  0xf4   :  { %v221_v45 = vpack.c.bf16 %v3298_v44, %v3297_v42  ;;  %v174_v46 = vpop.f32.mrb[3].mxu0 }
  0xf5   :  { %v218_v47 = vpack.c.bf16 %v174_v46, %v171_v43 }
  0xf9   :  { %v3301_v48 = vpop.f32.mrb[4].mxu0 }
  0xfa   :  { %v187_v49 = vpop.f32.mrb[5].mxu0 }
  0xfb   :  { %v3302_v50 = vpop.f32.mrb[6].mxu0 }
  0xfc   :  { %v222_v51 = vpack.c.bf16 %v3302_v50, %v3301_v48  ;;  %v190_v52 = vpop.f32.mrb[7].mxu0 }
  0xfd   :  { %v219_v53 = vpack.c.bf16 %v190_v52, %v187_v49 }
  0xff   :  { %455 = vmatprep.mubr.bf16.mxu1 %v219_v53 }
 0x100   :  { %456 = vmatmul.mubr.bf16.vlgmr.msra.gmra.mrb[0].mxu1 %v218_v47 }
 0x101   :  { %v3305_v54 = vpop.f32.mrb[8].mxu0  ;;  %463 = vmatprep.mubr.bf16.mxu1 %v222_v51 }
 0x102   :  { %v203_v55 = vpop.f32.mrb[9].mxu0 }
 0x103   :  { %v3306_v56 = vpop.f32.mrb[10].mxu0 }
 0x104   :  { %v223_v57 = vpack.c.bf16 %v3306_v56, %v3305_v54  ;;  %v206_v58 = vpop.f32.mrb[11].mxu0 }
 0x105   :  { %v220_v59 = vpack.c.bf16 %v206_v58, %v203_v55 }
 0x107   :  { %3323 = vmatprep.mubr.bf16.mxu0 %v220_v59 }
 0x108   :  { %464 = vmatmul.mubr.bf16.gmra.mrb[4].mxu1 %v221_v45  ;;  %3324 = vmatmul.mubr.bf16.vlgmr.msra.gmra.mrb[12].mxu0 %v223_v57 }
 0x109   :  { %3331 = vmatprep.mubr.msk.bf16.mxu1 %vm669_vm1, %v3500_v60  ;;  %3098 = vmatpush3.bf16.msra.mxu0 %v3507_v62 }
 0x10a   :  { %3099 = vmatprep.subr.bf16.mxu0 %v3508_v63 }
 0x10d   :  { %3100 = vmatpush3.bf16.msra.mxu0 %v3509_v0 }
 0x10e   :  { %3101 = vmatprep.subr.bf16.mxu0 %v3510_v1 }
 0x111   :  { %3102 = vmatpush3.bf16.msra.mxu0 %v3512_v2 }
 0x112   :  { %3103 = vmatprep.subr.bf16.mxu0 %v3513_v3 }
 0x115   :  { %3104 = vmatpush3.bf16.msra.mxu0 %v3515_v4 }
 0x116   :  { %3105 = vmatprep.subr.bf16.mxu0 %v3516_v5 }
 0x119   :  { %3106 = vmatpush3.bf16.msra.mxu0 %v3518_v6 }
 0x1d3   :  { %v3067_v7 = vpop.f32.mrb[0].mxu1 }
 0x1d4   :  { %v3068_v8 = vpop.f32.mrb[1].mxu1 }
 0x1d5   :  { %v3069_v9 = vadd.f32 %v3068_v8, %v3067_v7  ;;  %v3070_v10 = vpop.f32.mrb[2].mxu1 }
 0x1d6   :  { %v3071_v11 = vpop.f32.mrb[3].mxu1 }
 0x1d7   :  { %v3072_v12 = vadd.f32 %v3071_v11, %v3070_v10  ;;  %v458_v16 = vadd.f32 %v3069_v9, %v2851_v13 }
 0x1d9   :  { %v461_v24 = vadd.f32 %v3072_v12, %v2851_v13 }
 0x1db   :  { %v3073_v14 = vpop.f32.mrb[4].mxu1  ;;  %v3325_v15 = vpop.f32.mrb[12].mxu0 }
 0x1dc   :  { %v3074_v17 = vpop.f32.mrb[5].mxu1  ;;  %v506_v18 = vpop.f32.mrb[13].mxu0 }
 0x1dd   :  { %v3075_v19 = vadd.f32 %v3074_v17, %v3073_v14  ;;  %v3981_v20 = vadd.f32 %v506_v18, %v458_v16  ;;  %v3076_v21 = vpop.f32.mrb[6].mxu1  ;;  %v3326_v22 = vpop.f32.mrb[14].mxu0 }
 0x1de   :  { %v3077_v23 = vpop.f32.mrb[7].mxu1  ;;  %v509_v25 = vpop.f32.mrb[15].mxu0 }
 0x1df   :  { %v466_v26 = vadd.f32 %v3075_v19, %v2851_v13  ;;  %v3984_v27 = vmul.f32 0.70710677, %v3981_v20  ;;  %v3078_v28 = vadd.f32 %v3077_v23, %v3076_v21  ;;  %v3986_v29 = vadd.f32 %v509_v25, %v461_v24 }
 0x1e1   :  { %v3988_v30 = vadd.f32 %v3325_v15, %v466_v26  ;;  %v537_v31 = vand.u32 2147483647, %v3984_v27  ;;  %v469_v32 = vadd.f32 %v3078_v28, %v2851_v13  ;;  %v3992_v33 = vmul.f32 0.70710677, %v3986_v29 }
 0x1e2   :  { %vm529_vm2 = vcmp.ge.f32.partialorder %v3984_v27, 0.0 }
 0x1e3   :  { %v3995_v34 = vmul.f32 0.70710677, %v3988_v30  ;;  %v541_v35 = vmul.f32 0.3275911, %v537_v31  ;;  %v3997_v36 = vadd.f32 %v3326_v22, %v469_v32  ;;  %v538_v37 = vand.u32 2147483647, %v3992_v33 }
 0x1e4   :  { %v589_v48 = vsub.f32 0.0, %v537_v31  ;;  %vm530_vm3 = vcmp.ge.f32.partialorder %v3992_v33, 0.0 }
 0x1e5   :  { %v539_v38 = vand.u32 2147483647, %v3995_v34  ;;  %v545_v39 = vadd.f32 1.0, %v541_v35  ;;  %v4002_v40 = vmul.f32 0.70710677, %v3997_v36  ;;  %v590_v49 = vsub.f32 0.0, %v538_v37 }
 0x1e6   :  { %v542_v41 = vmul.f32 0.3275911, %v538_v37  ;;  %v593_v52 = vmul.f32 %v589_v48, %v537_v31  ;;  %vm531_vm4 = vcmp.ge.f32.partialorder %v3995_v34, 0.0  ;;  %v522_v34 = vmul.f32 0.5, %v3986_v29  ;;  %v3511_v29 = vld [vmem:[%s4549_s5 + $0x80] sm:$0xff]  }
 0x1e7   :  { %v543_v42 = vmul.f32 0.3275911, %v539_v38  ;;  %3644 = vrcp.f32 %v545_v39  ;;  %v540_v43 = vand.u32 2147483647, %v4002_v40  ;;  %v591_v51 = vsub.f32 0.0, %v539_v38 }
 0x1e8   :  { %v546_v44 = vadd.f32 1.0, %v542_v41  ;;  %v594_v57 = vmul.f32 %v590_v49, %v538_v37  ;;  %v597_v60 = vmul.f32 1.442695, %v593_v52  ;;  %vm532_vm5 = vcmp.ge.f32.partialorder %v4002_v40, 0.0 }
 0x1e9   :  { %v547_v45 = vadd.f32 1.0, %v543_v42  ;;  %v544_v46 = vmul.f32 0.3275911, %v540_v43  ;;  %v592_v56 = vsub.f32 0.0, %v540_v43  ;;  %v595_v59 = vmul.f32 %v591_v51, %v539_v38 }
 0x1ea   :  { %3646 = vrcp.f32 %v546_v44  ;;  %v599_v4 = vmul.f32 1.442695, %v594_v57 }
 0x1eb   :  { %3648 = vrcp.f32 %v547_v45  ;;  %v548_v47 = vadd.f32 1.0, %v544_v46  ;;  %v596_v3 = vmul.f32 %v592_v56, %v540_v43  ;;  %v601_v6 = vmul.f32 1.442695, %v595_v59 }
 0x1ed   :  { %3650 = vrcp.f32 %v548_v47  ;;  %v603_v14 = vmul.f32 1.442695, %v596_v3  ;;  %v3720_v47 = vmov -1.0  }
 0x1ee   :  { %3652 = vpow2.f32 %v597_v60  ;;  %v533_v48 = vsel %vm529_vm2, 1.0, %v3720_v47  ;;  %v535_v59 = vsel %vm531_vm4, 1.0, %v3720_v47  ;;  %vm2422_vm2 = vcmask 1043456  }
 0x1ef   :  { %3654 = vpow2.f32 %v599_v4  ;;  %v523_v4 = vmul.f32 0.5, %v3988_v30  ;;  %v3502_v30 = vld [vmem:[%s4548_s4 + $0x10] sm:$0xff]  }
 0x1f0   :  { %3656 = vpow2.f32 %v601_v6 }
 0x1f1   :  { %v3645_v50 = vpop.eup %3644  ;;  %3658 = vpow2.f32 %v603_v14  ;;  %v3505_v14 = vld [vmem:[%s4548_s4 + $0x28] sm:$0xff]  }
 0x1f2   :  { %v553_v53 = vmul.f32 1.0614054, %v3645_v50 }
 0x1f4   :  { %v3647_v54 = vpop.eup %3646  ;;  %v557_v55 = vadd.f32 -1.4531521, %v553_v53 }
 0x1f5   :  { %v3649_v58 = vpop.eup %3648  ;;  %v554_v61 = vmul.f32 1.0614054, %v3647_v54 }
 0x1f6   :  { %v561_v62 = vmul.f32 %v3645_v50, %v557_v55  ;;  %v555_v63 = vmul.f32 1.0614054, %v3649_v58 }
 0x1f7   :  { %v558_v0 = vadd.f32 -1.4531521, %v554_v61  ;;  %v3651_v1 = vpop.eup %3650  ;;  %v521_v61 = vmul.f32 0.5, %v3981_v20 }
 0x1f8   :  { %v565_v2 = vadd.f32 1.4214138, %v561_v62  ;;  %v559_v5 = vadd.f32 -1.4531521, %v555_v63  ;;  %v556_v8 = vmul.f32 1.0614054, %v3651_v1  ;;  %v3653_v32 = vpop.eup %3652 }
 0x1f9   :  { %v562_v7 = vmul.f32 %v3647_v54, %v558_v0  ;;  %v3655_v43 = vpop.eup %3654  ;;  %v536_v0 = vsel %vm532_vm5, 1.0, %v3720_v47 }
 0x1fa   :  { %v569_v9 = vmul.f32 %v3645_v50, %v565_v2  ;;  %v563_v10 = vmul.f32 %v3649_v58, %v559_v5  ;;  %v560_v12 = vadd.f32 -1.4531521, %v556_v8  ;;  %v3657_v46 = vpop.eup %3656  ;;  %v524_v5 = vmul.f32 0.5, %v3997_v36  ;;  %v3514_v36 = vld [vmem:[%s4549_s5 + $0x88] sm:$0xff]  }
 0x1fb   :  { %v566_v11 = vadd.f32 1.4214138, %v562_v7  ;;  %v3659_v55 = vpop.eup %3658 }
 0x1fc   :  { %v573_v13 = vadd.f32 -0.28449672, %v569_v9  ;;  %v567_v15 = vadd.f32 1.4214138, %v563_v10  ;;  %v564_v17 = vmul.f32 %v3651_v1, %v560_v12  ;;  %v3501_v10 = vld [vmem:[%s4548_s4 + $0x8] sm:$0xff]   ;;  %v3503_v12 = vld [vmem:[%s4548_s4 + $0x18] sm:$0xff]  }
 0x1fd   :  { %v570_v16 = vmul.f32 %v3647_v54, %v566_v11  ;;  %v3517_v11 = vld [vmem:[%s4549_s5 + $0x90] sm:$0xff]  }
 0x1fe   :  { %v577_v18 = vmul.f32 %v3645_v50, %v573_v13  ;;  %v571_v19 = vmul.f32 %v3649_v58, %v567_v15  ;;  %v568_v22 = vadd.f32 1.4214138, %v564_v17  ;;  %v3504_v13 = vld [vmem:[%s4548_s4 + $0x20] sm:$0xff]   ;;  %v3519_v15 = vld [vmem:[%s4549_s5 + $0x68] sm:$0xff]  }
 0x1ff   :  { %v574_v21 = vadd.f32 -0.28449672, %v570_v16  ;;  %v3520_v16 = vld [vmem:[%s4549_s5 + $0x98] sm:$0xff]   ;;  %v3521_v17 = vld [vmem:[%s4549_s5 + $0x28] sm:$0xff]   ;;  %3107 = vmatprep.subr.bf16.mxu0 %v3519_v15 }
 0x200   :  { %v581_v23 = vadd.f32 0.2548296, %v577_v18  ;;  %v575_v24 = vadd.f32 -0.28449672, %v571_v19  ;;  %v572_v26 = vmul.f32 %v3651_v1, %v568_v22  ;;  %v3522_v18 = vld [vmem:[%s4549_s5 + $0x70] sm:$0xff]   ;;  %v3523_v19 = vld [vmem:[%s4549_s5 + $0xa0] sm:$0xff]   ;;  %3108 = vmatpush3.bf16.msra.mxu0 %v3521_v17 }
 0x201   :  { %v578_v25 = vmul.f32 %v3647_v54, %v574_v21  ;;  %3109 = vmatprep.subr.bf16.mxu0 %v3522_v18  ;;  %v3524_v21 = vld [vmem:[%s4549_s5 + $0x30] sm:$0xff]   ;;  %v3525_v22 = vld [vmem:[%s4549_s5 + $0x78] sm:$0xff]  }
 0x202   :  { %v585_v28 = vmul.f32 %v3645_v50, %v581_v23  ;;  %v579_v31 = vmul.f32 %v3649_v58, %v575_v24  ;;  %v576_v37 = vadd.f32 -0.28449672, %v572_v26  ;;  %v3526_v23 = vld [vmem:[%s4549_s5 + $0xa8] sm:$0xff]   ;;  %v3527_v24 = vld [vmem:[%s4549_s5 + $0x38] sm:$0xff]  }
 0x203   :  { %v582_v35 = vadd.f32 0.2548296, %v578_v25  ;;  %v3528_v25 = vld [vmem:[%s4549_s5 + $0xb0] sm:$0xff]   ;;  %v3529_v26 = vld [vmem:[%s4549_s5 + $0xb8] sm:$0xff]  }
 0x204   :  { %v605_v38 = vmul.f32 %v3653_v32, %v585_v28  ;;  %v583_v39 = vadd.f32 0.2548296, %v579_v31  ;;  %v580_v42 = vmul.f32 %v3651_v1, %v576_v37  ;;  %3110 = vmatpush3.bf16.msra.mxu0 %v3524_v21 }
 0x205   :  { %v586_v41 = vmul.f32 %v3647_v54, %v582_v35  ;;  %v534_v54 = vsel %vm530_vm3, 1.0, %v3720_v47  ;;  %3111 = vmatprep.subr.bf16.mxu0 %v3525_v22  ;;  %vm2823_vm3 = vcmask 254976  }
 0x206   :  { %v609_v44 = vsub.f32 1.0, %v605_v38  ;;  %v587_v45 = vmul.f32 %v3649_v58, %v583_v39  ;;  %v584_v50 = vadd.f32 0.2548296, %v580_v42 }
 0x207   :  { %v606_v49 = vmul.f32 %v3655_v43, %v586_v41 }
 0x208   :  { %v613_v51 = vmul.f32 %v609_v44, %v533_v48  ;;  %v607_v52 = vmul.f32 %v3657_v46, %v587_v45  ;;  %v588_v53 = vmul.f32 %v3651_v1, %v584_v50  ;;  %3112 = vmatpush3.bf16.msra.mxu0 %v3527_v24 }
 0x209   :  { %v610_v27 = vsub.f32 1.0, %v606_v49 }
 0x20a   :  { %v611_v56 = vsub.f32 1.0, %v607_v52  ;;  %v617_v57 = vadd.f32 1.0, %v613_v51  ;;  %v608_v60 = vmul.f32 %v3659_v55, %v588_v53  ;;  %v3533_v53 = vld [vmem:[%s4552_s8 + $0x40] sm:$0xff]  }
 0x20b   :  { %v614_v58 = vmul.f32 %v610_v27, %v534_v54  ;;  %v3721_v27 = vmov 0.0   ;;  %v3534_v55 = vld [vmem:[%s4552_s8] sm:$0xff]   ;;  %v3535_v54 = vld [vmem:[%s4552_s8 + $0x48] sm:$0xff]   ;;  %3140 = vmatprep.subr.bf16.mxu0 %v3533_v53 }
 0x20c   :  { %v615_v33 = vmul.f32 %v611_v56, %v535_v59  ;;  %v612_v63 = vsub.f32 1.0, %v608_v60  ;;  %v621_v1 = vmul.f32 %v617_v57, %v521_v61  ;;  %v3536_v56 = vld [vmem:[%s4552_s8 + $0x8] sm:$0xff]   ;;  %v3537_v57 = vld [vmem:[%s4552_s8 + $0x50] sm:$0xff]   ;;  %v3540_v59 = vld [vmem:[%s4552_s8 + $0x58] sm:$0xff]  }
 0x20d   :  { %v618_v62 = vadd.f32 1.0, %v614_v58  ;;  %v3539_v58 = vld [vmem:[%s4552_s8 + $0x10] sm:$0xff]   ;;  %v3542_v60 = vld [vmem:[%s4552_s8 + $0x18] sm:$0xff]   ;;  %v3545_v61 = vld [vmem:[%s4552_s8 + $0x20] sm:$0xff]  }
 0x20e   :  { %v616_v40 = vmul.f32 %v612_v63, %v536_v0  ;;  %v619_v3 = vadd.f32 1.0, %v615_v33  ;;  %v3543_v33 = vld [vmem:[%s4552_s8 + $0x60] sm:$0xff]  }
 0x20f   :  { %v622_v2 = vmul.f32 %v618_v62, %v522_v34 }
 0x210   :  { %v620_v7 = vadd.f32 1.0, %v616_v40  ;;  %v623_v8 = vmul.f32 %v619_v3, %v523_v4  ;;  %v2888_v40 = vld [vmem:[%s4550_s6] ss:$0 sm:$0xff] }
 0x211   :  { %v637_v6 = vpack.c.bf16 %v622_v2, %v621_v1 }
 0x212   :  { %v624_v9 = vmul.f32 %v620_v7, %v524_v5 }
 0x213   :  { %3327 = vmatprep.subr.bf16.mxu1 %v637_v6 }
 0x214   :  { %3328 = vmatpush3.bf16.msra.mxu1 %v637_v6  ;;  %v638_v20 = vpack.c.bf16 %v624_v9, %v623_v8 }
 0x216   :  { %3329 = vmatprep.subr.bf16.mxu1 %v638_v20 }
 0x218   :  { %3330 = vmatpush3.bf16.msra.mxu1 %v638_v20 }
 0x219   :  { %3343 = vmatprep.subr.bf16.mxu1 %v3511_v29 }
 0x21b   :  { %3332 = vmatmul.mubr.msk.bf16.vlgmr.msra.gmra.mrb[8].mxu1 %vm669_vm1, %v3501_v10 }
 0x21c   :  { %3335 = vmatprep.mubr.msk.bf16.mxu1 %vm669_vm1, %v3502_v30  ;;  %3344 = vmatpush3.bf16.msra.mxu1 %v3511_v29 }
 0x21d   :  { %3345 = vmatprep.subr.bf16.mxu1 %v3514_v36 }
 0x220   :  { %3346 = vmatpush3.bf16.msra.mxu1 %v3514_v36 }
 0x221   :  { %3347 = vmatprep.subr.bf16.mxu1 %v3517_v11 }
 0x223   :  { %3336 = vmatmul.mubr.msk.bf16.gmra.mrb[12].mxu1 %vm669_vm1, %v3503_v12 }
 0x224   :  { %3339 = vmatprep.mubr.msk.bf16.mxu1 %vm669_vm1, %v3504_v13  ;;  %3348 = vmatpush3.bf16.msra.mxu1 %v3517_v11 }
 0x225   :  { %3349 = vmatprep.subr.bf16.mxu1 %v3520_v16 }
 0x228   :  { %3350 = vmatpush3.bf16.msra.mxu1 %v3520_v16 }
 0x229   :  { %3351 = vmatprep.subr.bf16.mxu1 %v3523_v19 }
 0x22b   :  { %3340 = vmatmul.mubr.msk.bf16.gmra.mrb[16].mxu1 %vm669_vm1, %v3505_v14 }
 0x22c   :  { %3352 = vmatpush3.bf16.msra.mxu1 %v3523_v19 }
 0x22d   :  { %3353 = vmatprep.subr.bf16.mxu1 %v3526_v23 }
 0x230   :  { %3354 = vmatpush3.bf16.msra.mxu1 %v3526_v23 }
 0x231   :  { %3355 = vmatprep.subr.bf16.mxu1 %v3528_v25 }
 0x234   :  { %3356 = vmatpush3.bf16.msra.mxu1 %v3528_v25 }
 0x235   :  { %3357 = vmatprep.subr.bf16.mxu1 %v3529_v26 }
 0x238   :  { %3358 = vmatpush3.bf16.msra.mxu1 %v3529_v26 }
 0x239   :  { %3363 = vmatprep.subr.bf16.mxu1 %v3721_v27 }
 0x2ee   :  { %v3333_v28 = vpop.f32.mrb[8].mxu1 }
 0x2ef   :  { %v722_v31 = vpop.f32.mrb[9].mxu1 }
 0x2f0   :  { %v3334_v32 = vpop.f32.mrb[10].mxu1 }
 0x2f1   :  { %v772_v35 = vpack.c.bf16 %v3334_v32, %v3333_v28  ;;  %v725_v37 = vpop.f32.mrb[11].mxu1 }
 0x2f2   :  { %v769_v38 = vpack.c.bf16 %v725_v37, %v722_v31 }
 0x2f6   :  { %v3337_v39 = vpop.f32.mrb[12].mxu1 }
 0x2f7   :  { %v738_v41 = vpop.f32.mrb[13].mxu1 }
 0x2f8   :  { %v3338_v42 = vpop.f32.mrb[14].mxu1 }
 0x2f9   :  { %v773_v43 = vpack.c.bf16 %v3338_v42, %v3337_v39  ;;  %v741_v44 = vpop.f32.mrb[15].mxu1 }
 0x2fa   :  { %v770_v45 = vpack.c.bf16 %v741_v44, %v738_v41 }
 0x2fc   :  { %1006 = vmatprep.mubr.bf16.mxu0 %v770_v45 }
 0x2fd   :  { %1007 = vmatmul.mubr.bf16.vlgmr.msra.gmra.mrb[16].mxu0 %v769_v38 }
 0x2fe   :  { %v3341_v46 = vpop.f32.mrb[16].mxu1  ;;  %1014 = vmatprep.mubr.bf16.mxu0 %v773_v43  ;;  %3141 = vmatpush3.bf16.msra.mxu0 %v3534_v55 }
 0x2ff   :  { %v754_v48 = vpop.f32.mrb[17].mxu1  ;;  %3142 = vmatprep.subr.bf16.mxu0 %v3535_v54 }
 0x300   :  { %v3342_v49 = vpop.f32.mrb[18].mxu1 }
 0x301   :  { %v774_v50 = vpack.c.bf16 %v3342_v49, %v3341_v46  ;;  %v757_v51 = vpop.f32.mrb[19].mxu1 }
 0x302   :  { %v771_v52 = vpack.c.bf16 %v757_v51, %v754_v48  ;;  %3143 = vmatpush3.bf16.msra.mxu0 %v3536_v56 }
 0x303   :  { %3144 = vmatprep.subr.bf16.mxu0 %v3537_v57 }
 0x304   :  { %3359 = vmatprep.mubr.bf16.mxu1 %v771_v52 }
 0x305   :  { %1015 = vmatmul.mubr.bf16.gmra.mrb[20].mxu0 %v772_v35  ;;  %3360 = vmatmul.mubr.bf16.vlgmr.msra.gmra.mrb[20].mxu1 %v774_v50 }
 0x306   :  { %3367 = vmatprep.mubr.msk.bf16.mxu1 %vm3722_vm6, %v3721_v27  ;;  %3145 = vmatpush3.bf16.msra.mxu0 %v3539_v58 }
 0x307   :  { %3146 = vmatprep.subr.bf16.mxu0 %v3540_v59 }
 0x30a   :  { %3147 = vmatpush3.bf16.msra.mxu0 %v3542_v60 }
 0x30b   :  { %3148 = vmatprep.subr.bf16.mxu0 %v3543_v33 }
 0x30e   :  { %3149 = vmatpush3.bf16.msra.mxu0 %v3545_v61 }
 0x3d0   :  { %v3113_v34 = vpop.f32.mrb[16].mxu0 }
 0x3d1   :  { %v3114_v62 = vpop.f32.mrb[17].mxu0 }
 0x3d2   :  { %v3115_v63 = vadd.f32 %v3114_v62, %v3113_v34  ;;  %v3116_v0 = vpop.f32.mrb[18].mxu0 }
 0x3d3   :  { %v3117_v1 = vpop.f32.mrb[19].mxu0 }
 0x3d4   :  { %v3118_v2 = vadd.f32 %v3117_v1, %v3116_v0  ;;  %v1009_v5 = vadd.f32 %v3115_v63, %v2888_v40 }
 0x3d6   :  { %v1012_v30 = vadd.f32 %v3118_v2, %v2888_v40 }
 0x3d8   :  { %v3119_v3 = vpop.f32.mrb[20].mxu0  ;;  %v3361_v4 = vpop.f32.mrb[20].mxu1 }
 0x3d9   :  { %v3120_v6 = vpop.f32.mrb[21].mxu0  ;;  %v1057_v7 = vpop.f32.mrb[21].mxu1 }
 0x3da   :  { %v3121_v8 = vadd.f32 %v3120_v6, %v3119_v3  ;;  %v4115_v9 = vadd.f32 %v1057_v7, %v1009_v5  ;;  %v3122_v20 = vpop.f32.mrb[22].mxu0  ;;  %v3362_v29 = vpop.f32.mrb[22].mxu1 }
 0x3db   :  { %v3123_v10 = vpop.f32.mrb[23].mxu0  ;;  %v1060_v36 = vpop.f32.mrb[23].mxu1 }
 0x3dc   :  { %v1017_v11 = vadd.f32 %v3121_v8, %v2888_v40  ;;  %v4118_v12 = vmul.f32 0.70710677, %v4115_v9  ;;  %v3124_v13 = vadd.f32 %v3123_v10, %v3122_v20  ;;  %v4120_v14 = vadd.f32 %v1060_v36, %v1012_v30 }
 0x3de   :  { %v4122_v15 = vadd.f32 %v3361_v4, %v1017_v11  ;;  %v1088_v16 = vand.u32 2147483647, %v4118_v12  ;;  %v1020_v17 = vadd.f32 %v3124_v13, %v2888_v40  ;;  %v4126_v18 = vmul.f32 0.70710677, %v4120_v14 }
 0x3df   :  { %vm1080_vm7 = vcmp.ge.f32.partialorder %v4118_v12, 0.0 }
 0x3e0   :  { %v4129_v19 = vmul.f32 0.70710677, %v4122_v15  ;;  %v1092_v21 = vmul.f32 0.3275911, %v1088_v16  ;;  %v4131_v22 = vadd.f32 %v3362_v29, %v1020_v17  ;;  %v1089_v23 = vand.u32 2147483647, %v4126_v18 }
 0x3e1   :  { %v1140_v41 = vsub.f32 0.0, %v1088_v16  ;;  %vm1081_vm9 = vcmp.ge.f32.partialorder %v4126_v18, 0.0 }
 0x3e2   :  { %v1090_v24 = vand.u32 2147483647, %v4129_v19  ;;  %v1096_v25 = vadd.f32 1.0, %v1092_v21  ;;  %v4136_v26 = vmul.f32 0.70710677, %v4131_v22  ;;  %v1141_v46 = vsub.f32 0.0, %v1089_v23 }
 0x3e3   :  { %v1093_v32 = vmul.f32 0.3275911, %v1089_v23  ;;  %v1144_v44 = vmul.f32 %v1140_v41, %v1088_v16  ;;  %vm1082_vm8 = vcmp.ge.f32.partialorder %v4129_v19, 0.0 }
 0x3e4   :  { %v1094_v28 = vmul.f32 0.3275911, %v1090_v24  ;;  %3660 = vrcp.f32 %v1096_v25  ;;  %v1091_v31 = vand.u32 2147483647, %v4136_v26  ;;  %v1142_v43 = vsub.f32 0.0, %v1090_v24 }
 0x3e5   :  { %v1097_v38 = vadd.f32 1.0, %v1093_v32  ;;  %v1148_v52 = vmul.f32 1.442695, %v1144_v44  ;;  %v1145_v56 = vmul.f32 %v1141_v46, %v1089_v23  ;;  %vm1083_vm10 = vcmp.ge.f32.partialorder %v4136_v26, 0.0 }
 0x3e6   :  { %v1098_v35 = vadd.f32 1.0, %v1094_v28  ;;  %v1095_v37 = vmul.f32 0.3275911, %v1091_v31  ;;  %v1143_v49 = vsub.f32 0.0, %v1091_v31  ;;  %v1146_v51 = vmul.f32 %v1142_v43, %v1090_v24 }
 0x3e7   :  { %v1150_v1 = vmul.f32 1.442695, %v1145_v56 }
 0x3e8   :  { %3662 = vrcp.f32 %v1098_v35  ;;  %v1099_v39 = vadd.f32 1.0, %v1095_v37  ;;  %v1147_v33 = vmul.f32 %v1143_v49, %v1091_v31  ;;  %v1152_v61 = vmul.f32 1.442695, %v1146_v51 }
 0x3e9   :  { %3664 = vrcp.f32 %v1097_v38  ;;  %v1086_v51 = vsel %vm1082_vm8, 1.0, %v3720_v47 }
 0x3ea   :  { %3666 = vrcp.f32 %v1099_v39  ;;  %v1154_v5 = vmul.f32 1.442695, %v1147_v33 }
 0x3eb   :  { %3668 = vpow2.f32 %v1148_v52 }
 0x3ec   :  { %3670 = vpow2.f32 %v1152_v61  ;;  %v1074_v61 = vmul.f32 0.5, %v4122_v15  ;;  %v3541_v15 = vld [vmem:[%s4552_s8 + $0x88] sm:$0xff]  }
 0x3ed   :  { %3672 = vpow2.f32 %v1150_v1 }
 0x3ee   :  { %v3661_v42 = vpop.eup %3660  ;;  %3674 = vpow2.f32 %v1154_v5  ;;  %v3546_v5 = vld [vmem:[%s4552_s8 + $0x68] sm:$0xff]  }
 0x3ef   :  { %v1104_v45 = vmul.f32 1.0614054, %v3661_v42  ;;  %3150 = vmatprep.subr.bf16.mxu0 %v3546_v5 }
 0x3f1   :  { %v1108_v48 = vadd.f32 -1.4531521, %v1104_v45 }
 0x3f2   :  { %v3663_v50 = vpop.eup %3662 }
 0x3f3   :  { %v3665_v53 = vpop.eup %3664  ;;  %v1106_v55 = vmul.f32 1.0614054, %v3663_v50  ;;  %v1112_v54 = vmul.f32 %v3661_v42, %v1108_v48 }
 0x3f4   :  { %v1105_v57 = vmul.f32 1.0614054, %v3665_v53  ;;  %v3667_v58 = vpop.eup %3666 }
 0x3f5   :  { %v1110_v59 = vadd.f32 -1.4531521, %v1106_v55  ;;  %v1116_v60 = vadd.f32 1.4214138, %v1112_v54  ;;  %v1107_v34 = vmul.f32 1.0614054, %v3667_v58  ;;  %v3669_v21 = vpop.eup %3668 }
 0x3f6   :  { %v1109_v62 = vadd.f32 -1.4531521, %v1105_v57  ;;  %v3671_v38 = vpop.eup %3670  ;;  %v1085_v55 = vsel %vm1081_vm9, 1.0, %v3720_v47  ;;  %v1072_v57 = vmul.f32 0.5, %v4115_v9  ;;  %v3530_v9 = vld [vmem:[%s4551_s7] sm:$0xff]  }
 0x3f7   :  { %v1114_v63 = vmul.f32 %v3663_v50, %v1110_v59  ;;  %v1120_v0 = vmul.f32 %v3661_v42, %v1116_v60  ;;  %v1111_v2 = vadd.f32 -1.4531521, %v1107_v34  ;;  %v3673_v43 = vpop.eup %3672  ;;  %v1073_v60 = vmul.f32 0.5, %v4120_v14  ;;  %v3538_v14 = vld [vmem:[%s4552_s8 + $0x80] sm:$0xff]  }
 0x3f8   :  { %v1113_v40 = vmul.f32 %v3665_v53, %v1109_v62  ;;  %v3675_v49 = vpop.eup %3674  ;;  %v1075_v34 = vmul.f32 0.5, %v4131_v22  ;;  %v3531_v22 = vld [vmem:[%s4551_s7 + $0x8] sm:$0xff]  }
 0x3f9   :  { %v1118_v3 = vadd.f32 1.4214138, %v1114_v63  ;;  %v1124_v4 = vadd.f32 -0.28449672, %v1120_v0  ;;  %v1115_v6 = vmul.f32 %v3667_v58, %v1111_v2 }
 0x3fa   :  { %v1117_v7 = vadd.f32 1.4214138, %v1113_v40 }
 0x3fb   :  { %v1122_v8 = vmul.f32 %v3663_v50, %v1118_v3  ;;  %v1128_v20 = vmul.f32 %v3661_v42, %v1124_v4  ;;  %v1119_v29 = vadd.f32 1.4214138, %v1115_v6  ;;  %v3544_v3 = vld [vmem:[%s4552_s8 + $0x90] sm:$0xff]   ;;  %v3547_v6 = vld [vmem:[%s4552_s8 + $0x98] sm:$0xff]  }
 0x3fc   :  { %v1121_v10 = vmul.f32 %v3665_v53, %v1117_v7  ;;  %v3532_v4 = vld [vmem:[%s4551_s7 + $0x10] sm:$0xff]   ;;  %v3548_v7 = vld [vmem:[%s4552_s8 + $0x28] sm:$0xff]  }
 0x3fd   :  { %v1126_v30 = vadd.f32 -0.28449672, %v1122_v8  ;;  %v1132_v36 = vadd.f32 0.2548296, %v1128_v20  ;;  %v1123_v11 = vmul.f32 %v3667_v58, %v1119_v29  ;;  %v3549_v8 = vld [vmem:[%s4552_s8 + $0x70] sm:$0xff]   ;;  %v3550_v20 = vld [vmem:[%s4552_s8 + $0xa0] sm:$0xff]   ;;  %3151 = vmatpush3.bf16.msra.mxu0 %v3548_v7 }
 0x3fe   :  { %v1125_v13 = vadd.f32 -0.28449672, %v1121_v10  ;;  %v3551_v29 = vld [vmem:[%s4552_s8 + $0x30] sm:$0xff]   ;;  %3152 = vmatprep.subr.bf16.mxu0 %v3549_v8  ;;  %v3552_v10 = vld [vmem:[%s4552_s8 + $0x78] sm:$0xff]  }
 0x3ff   :  { %v1130_v16 = vmul.f32 %v3663_v50, %v1126_v30  ;;  %v1136_v17 = vmul.f32 %v3661_v42, %v1132_v36  ;;  %v1127_v23 = vadd.f32 -0.28449672, %v1123_v11  ;;  %v1084_v42 = vsel %vm1080_vm7, 1.0, %v3720_v47  ;;  %v3553_v30 = vld [vmem:[%s4552_s8 + $0xa8] sm:$0xff]   ;;  %v3554_v36 = vld [vmem:[%s4552_s8 + $0x38] sm:$0xff]   ;;  %v3555_v11 = vld [vmem:[%s4552_s8 + $0xb0] sm:$0xff]  }
 0x400   :  { %v1129_v24 = vmul.f32 %v3665_v53, %v1125_v13  ;;  %v3556_v13 = vld [vmem:[%s4552_s8 + $0xb8] sm:$0xff]  }
 0x401   :  { %v1134_v25 = vadd.f32 0.2548296, %v1130_v16  ;;  %v1156_v28 = vmul.f32 %v3669_v21, %v1136_v17  ;;  %v1131_v31 = vmul.f32 %v3667_v58, %v1127_v23  ;;  %3153 = vmatpush3.bf16.msra.mxu0 %v3551_v29 }
 0x402   :  { %v1133_v32 = vadd.f32 0.2548296, %v1129_v24  ;;  %3154 = vmatprep.subr.bf16.mxu0 %v3552_v10 }
 0x403   :  { %v1138_v35 = vmul.f32 %v3663_v50, %v1134_v25  ;;  %v1160_v37 = vsub.f32 1.0, %v1156_v28  ;;  %v1135_v39 = vadd.f32 0.2548296, %v1131_v31 }
 0x404   :  { %v1137_v41 = vmul.f32 %v3665_v53, %v1133_v32 }
 0x405   :  { %v1158_v44 = vmul.f32 %v3671_v38, %v1138_v35  ;;  %v1164_v45 = vmul.f32 %v1160_v37, %v1084_v42  ;;  %v1139_v46 = vmul.f32 %v3667_v58, %v1135_v39  ;;  %v1087_v58 = vsel %vm1083_vm10, 1.0, %v3720_v47  ;;  %3155 = vmatpush3.bf16.msra.mxu0 %v3554_v36  ;;  %v3568_v42 = vld [vmem:[%s4555_s11 + $0x88] sm:$0xff]  }
 0x406   :  { %v1157_v48 = vmul.f32 %v3673_v43, %v1137_v41  ;;  %3399 = vmatprep.subr.bf16.mxu0 %v3721_v27 }
 0x407   :  { %v1162_v12 = vsub.f32 1.0, %v1158_v44  ;;  %v1159_v50 = vmul.f32 %v3675_v49, %v1139_v46  ;;  %v1168_v19 = vadd.f32 1.0, %v1164_v45  ;;  %v3565_v44 = vld [vmem:[%s4555_s11 + $0x80] sm:$0xff]   ;;  %v3571_v45 = vld [vmem:[%s4555_s11 + $0x90] sm:$0xff]  }
 0x408   :  { %v1161_v52 = vsub.f32 1.0, %v1157_v48 }
 0x409   :  { %v1166_v53 = vmul.f32 %v1162_v12, %v1086_v51  ;;  %v1163_v54 = vsub.f32 1.0, %v1159_v50  ;;  %v1172_v26 = vmul.f32 %v1168_v19, %v1072_v57  ;;  %v2919_v50 = vld [vmem:[%s4553_s9] ss:$0 sm:$0xff]  ;;  %s3723_s9 = smov [#allocation2]  }
 0x40a   :  { %v1165_v56 = vmul.f32 %v1161_v52, %v1085_v55  ;;  %s2831_s21 = sshll.u32 %s3723_s9, 4  ;;  %s2832_s21 = int_to_ptr.vmem [resolvable:$true] %s2831_s21 }
 0x40b   :  { %v1170_v18 = vadd.f32 1.0, %v1166_v53  ;;  %v1167_v59 = vmul.f32 %v1163_v54, %v1087_v58  ;;  %s3696_s1 = scalar_lea.vmem %s2832_s21, 32  ;;  %p3701_p1 = scmp.lt.s32.totalorder %s2832_s21, %s2832_s21 }
 0x40c   :  { %v1169_v33 = vadd.f32 1.0, %v1165_v56  ;;  %p3697_p0 = scmp.ne.s32.totalorder %s2832_s21, %s3696_s1  ;;  %p3702_p2 = scmp.lt.s32.totalorder %s3696_s1, %s3696_s1 }
 0x40d   :  { %v1171_v62 = vadd.f32 1.0, %v1167_v59  ;;  %v1174_v0 = vmul.f32 %v1170_v18, %v1074_v61 }
 0x40e   :  { %v1173_v63 = vmul.f32 %v1169_v33, %v1073_v60  ;;  %p3703_p3 = por %p3702_p2, %p3701_p1 }
 0x40f   :  { %v1175_v1 = vmul.f32 %v1171_v62, %v1075_v34 }
 0x410   :  { %v1182_v2 = vpack.c.bf16 %v1173_v63, %v1172_v26  ;;  %p3704_p4 = pnand %p3703_p3, %p3697_p0 }
 0x411   :  { %v1183_v40 = vpack.c.bf16 %v1175_v1, %v1174_v0 }
 0x412   :  { %3364 = vmatpush3.bf16.msra.mxu1 %v1182_v2 }
 0x413   :  { %3365 = vmatprep.subr.bf16.mxu1 %v3721_v27 }
 0x416   :  { %3366 = vmatpush3.bf16.msra.mxu1 %v1183_v40 }
 0x417   :  { %3379 = vmatprep.subr.bf16.mxu1 %v3721_v27 }
 0x419   :  { %3368 = vmatmul.mubr.msk.bf16.vlgmr.msra.gmra.mrb[24].mxu1 %vm669_vm1, %v3530_v9 }
 0x41a   :  { %3371 = vmatprep.mubr.msk.bf16.mxu1 %vm3722_vm6, %v3721_v27  ;;  %3380 = vmatpush3.bf16.msra.mxu1 %v3538_v14 }
 0x41b   :  { %3381 = vmatprep.subr.bf16.mxu1 %v3721_v27 }
 0x41e   :  { %3382 = vmatpush3.bf16.msra.mxu1 %v3541_v15 }
 0x41f   :  { %3383 = vmatprep.subr.bf16.mxu1 %v3721_v27 }
 0x421   :  { %3372 = vmatmul.mubr.msk.bf16.gmra.mrb[28].mxu1 %vm669_vm1, %v3531_v22 }
 0x422   :  { %3375 = vmatprep.mubr.msk.bf16.mxu1 %vm3722_vm6, %v3721_v27  ;;  %3384 = vmatpush3.bf16.msra.mxu1 %v3544_v3 }
 0x423   :  { %3385 = vmatprep.subr.bf16.mxu1 %v3721_v27 }
 0x426   :  { %3386 = vmatpush3.bf16.msra.mxu1 %v3547_v6 }
 0x427   :  { %3387 = vmatprep.subr.bf16.mxu1 %v3721_v27 }
 0x429   :  { %3376 = vmatmul.mubr.msk.bf16.gmra.mrb[32].mxu1 %vm669_vm1, %v3532_v4 }
 0x42a   :  { %3395 = vmatprep.mubr.msk.bf16.mxu1 %vm3722_vm6, %v3721_v27  ;;  %3388 = vmatpush3.bf16.msra.mxu1 %v3550_v20 }
 0x42b   :  { %3389 = vmatprep.subr.bf16.mxu1 %v3721_v27 }
 0x42e   :  { %3390 = vmatpush3.bf16.msra.mxu1 %v3553_v30 }
 0x42f   :  { %3391 = vmatprep.subr.bf16.mxu1 %v3721_v27 }
 0x432   :  { %3392 = vmatpush3.bf16.msra.mxu1 %v3555_v11 }
 0x433   :  { %3393 = vmatprep.subr.bf16.mxu1 %v3721_v27 }
 0x436   :  { %3394 = vmatpush3.bf16.msra.mxu1 %v3556_v13 }
 0x437   :  { %3413 = vmatprep.subr.bf16.mxu1 %v3721_v27 }
 0x4ec   :  { %v1242_v16 = vpop.f32.mrb[24].mxu1 }
 0x4ed   :  { %v3369_v17 = vpop.f32.mrb[25].mxu1 }
 0x4ee   :  { %v1245_v21 = vpop.f32.mrb[26].mxu1 }
 0x4ef   :  { %v1265_v23 = vpack.c.bf16 %v1245_v21, %v1242_v16  ;;  %v3370_v24 = vpop.f32.mrb[27].mxu1 }
 0x4f4   :  { %v1250_v25 = vpop.f32.mrb[28].mxu1 }
 0x4f5   :  { %v3373_v28 = vpop.f32.mrb[29].mxu1 }
 0x4f6   :  { %v1253_v31 = vpop.f32.mrb[30].mxu1 }
 0x4f7   :  { %v1266_v32 = vpack.c.bf16 %v1253_v31, %v1250_v25  ;;  %v3374_v35 = vpop.f32.mrb[31].mxu1 }
 0x4f9   :  { %1499 = vmatprep.mubr.bf16.mxu0 %v1266_v32 }
 0x4fa   :  { %1500 = vmatmul.mubr.bf16.vlgmr.msra.gmra.mrb[24].mxu0 %v1265_v23 }
 0x4fb   :  { %3401 = vmatprep.mubr.msk.bf16.mxu0 %vm3722_vm6, %v3721_v27 }
 0x4fc   :  { %v1258_v37 = vpop.f32.mrb[32].mxu1 }
 0x4fd   :  { %v3377_v38 = vpop.f32.mrb[33].mxu1 }
 0x4fe   :  { %v1261_v39 = vpop.f32.mrb[34].mxu1 }
 0x4ff   :  { %v1267_v41 = vpack.c.bf16 %v1261_v39, %v1258_v37  ;;  %v3378_v43 = vpop.f32.mrb[35].mxu1 }
 0x501   :  { %3396 = vmatmul.mubr.bf16.vlgmr.msra.gmra.mrb[36].mxu1 %v1267_v41 }
 0x502   :  { %3429 = vmatprep.mubr.msk.bf16.mxu1 %vm3722_vm6, %v3721_v27  ;;  %3414 = vmatpush3.bf16.msra.mxu1 %v3565_v44 }
 0x503   :  { %3415 = vmatprep.subr.bf16.mxu1 %v3721_v27 }
 0x506   :  { %3416 = vmatpush3.bf16.msra.mxu1 %v3568_v42 }
 0x507   :  { %3417 = vmatprep.subr.bf16.mxu1 %v3721_v27 }
 0x50a   :  { %3418 = vmatpush3.bf16.msra.mxu1 %v3571_v45 }
 0x50b   :  { %3419 = vmatprep.subr.bf16.mxu1 %v3721_v27 }
 0x5cd   :  { %v3156_v46 = vpop.f32.mrb[24].mxu0 }
 0x5ce   :  { %v3157_v48 = vpop.f32.mrb[25].mxu0 }
 0x5cf   :  { %v3158_v49 = vadd.f32 %v3157_v48, %v3156_v46  ;;  %v3159_v12 = vpop.f32.mrb[26].mxu0 }
 0x5d0   :  { %v3160_v51 = vpop.f32.mrb[27].mxu0 }
 0x5d1   :  { %v3161_v52 = vadd.f32 %v3160_v51, %v3159_v12  ;;  %v1502_v53 = vadd.f32 %v3158_v49, %v2919_v50  ;;  %v3560_v12 = vld [vmem:[%s4555_s11 + $0x40] sm:$0xff]  }
 0x5d3   :  { %v1505_v56 = vadd.f32 %v3161_v52, %v2919_v50  ;;  %v3557_v50 = vld [vmem:[%s4554_s10] sm:$0xff]  }
 0x5d4   :  { %v1542_v55 = vpop.f32.mrb[36].mxu1  ;;  %v3561_v52 = vld [vmem:[%s4555_s11] sm:$0xff]  }
 0x5d5   :  { %v1543_v19 = vadd.f32 %v1542_v55, %v1502_v53  ;;  %v3397_v54 = vpop.f32.mrb[37].mxu1  ;;  %v3562_v53 = vld [vmem:[%s4555_s11 + $0x48] sm:$0xff]  }
 0x5d6   :  { %v1545_v57 = vpop.f32.mrb[38].mxu1  ;;  %v3563_v55 = vld [vmem:[%s4555_s11 + $0x8] sm:$0xff]  }
 0x5d7   :  { %v1551_v58 = vmul.f32 0.70710677, %v1543_v19  ;;  %v1546_v18 = vadd.f32 %v1545_v57, %v1505_v56  ;;  %v3398_v59 = vpop.f32.mrb[39].mxu1  ;;  %v1549_v42 = vmul.f32 0.5, %v1543_v19  ;;  %v3564_v19 = vld [vmem:[%s4555_s11 + $0x50] sm:$0xff]   ;;  %v3558_v54 = vld [vmem:[%s4554_s10 + $0x8] sm:$0xff]  }
 0x5d8   :  { %v3566_v56 = vld [vmem:[%s4555_s11 + $0x10] sm:$0xff]   ;;  %v3567_v57 = vld [vmem:[%s4555_s11 + $0x58] sm:$0xff]  }
 0x5d9   :  { %v1557_v60 = vand.u32 2147483647, %v1551_v58  ;;  %v1552_v33 = vmul.f32 0.70710677, %v1546_v18  ;;  %vm1553_vm11 = vcmp.ge.f32.partialorder %v1551_v58, 0.0  ;;  %v1550_v45 = vmul.f32 0.5, %v1546_v18 }
 0x5da   :  { %v1555_v35 = vsel %vm1553_vm11, 1.0, %v3720_v47  ;;  %v3569_v58 = vld [vmem:[%s4555_s11 + $0x18] sm:$0xff]   ;;  %v3570_v18 = vld [vmem:[%s4555_s11 + $0x60] sm:$0xff]   ;;  %v3559_v59 = vld [vmem:[%s4554_s10 + $0x10] sm:$0xff]  }
 0x5db   :  { %v1559_v61 = vmul.f32 0.3275911, %v1557_v60  ;;  %v1558_v26 = vand.u32 2147483647, %v1552_v33  ;;  %v1583_v0 = vsub.f32 0.0, %v1557_v60  ;;  %vm1554_vm12 = vcmp.ge.f32.partialorder %v1552_v33, 0.0 }
 0x5dc   :  { %v1556_v41 = vsel %vm1554_vm12, 1.0, %v3720_v47  ;;  %v3573_v33 = vld [vmem:[%s4555_s11 + $0x68] sm:$0xff]  }
 0x5dd   :  { %v1561_v34 = vadd.f32 1.0, %v1559_v61  ;;  %v1560_v62 = vmul.f32 0.3275911, %v1558_v26  ;;  %v1584_v1 = vsub.f32 0.0, %v1558_v26  ;;  %v1585_v40 = vmul.f32 %v1583_v0, %v1557_v60  ;;  %v3572_v60 = vld [vmem:[%s4555_s11 + $0x20] sm:$0xff]   ;;  %v3574_v61 = vld [vmem:[%s4555_s11 + $0x98] sm:$0xff]  }
 0x5de   :  { %3420 = vmatpush3.bf16.msra.mxu1 %v3574_v61  ;;  %v3579_v0 = vld [vmem:[%s4555_s11 + $0x78] sm:$0xff]  }
 0x5df   :  { %3676 = vrcp.f32 %v1561_v34  ;;  %v1562_v63 = vadd.f32 1.0, %v1560_v62  ;;  %v1586_v22 = vmul.f32 %v1584_v1, %v1558_v26  ;;  %v1587_v3 = vmul.f32 1.442695, %v1585_v40  ;;  %v3575_v26 = vld [vmem:[%s4555_s11 + $0x28] sm:$0xff]   ;;  %3421 = vmatprep.subr.bf16.mxu1 %v3721_v27  ;;  %v3576_v34 = vld [vmem:[%s4555_s11 + $0x70] sm:$0xff]   ;;  %v3577_v62 = vld [vmem:[%s4555_s11 + $0xa0] sm:$0xff]  }
 0x5e0   :  { %v3580_v1 = vld [vmem:[%s4555_s11 + $0xa8] sm:$0xff]   ;;  %v3582_v40 = vld [vmem:[%s4555_s11 + $0xb0] sm:$0xff]  }
 0x5e1   :  { %3678 = vrcp.f32 %v1562_v63  ;;  %v1589_v8 = vmul.f32 1.442695, %v1586_v22  ;;  %v3578_v63 = vld [vmem:[%s4555_s11 + $0x30] sm:$0xff]  }
 0x5e2   :  { %3680 = vpow2.f32 %v1587_v3  ;;  %3422 = vmatpush3.bf16.msra.mxu1 %v3577_v62 }
 0x5e3   :  { %3682 = vpow2.f32 %v1589_v8  ;;  %3423 = vmatprep.subr.bf16.mxu1 %v3721_v27 }
 0x5e6   :  { %3424 = vmatpush3.bf16.msra.mxu1 %v3580_v1 }
 0x5e7   :  { %3425 = vmatprep.subr.bf16.mxu1 %v3721_v27 }
 0x5e9   :  { %v3677_v2 = vpop.eup %3676 }
 0x5ea   :  { %v1565_v9 = vmul.f32 1.0614054, %v3677_v2  ;;  %3426 = vmatpush3.bf16.msra.mxu1 %v3582_v40 }
 0x5eb   :  { %v3679_v14 = vpop.eup %3678  ;;  %3427 = vmatprep.subr.bf16.mxu1 %v3721_v27 }
 0x5ec   :  { %v1567_v15 = vadd.f32 -1.4531521, %v1565_v9  ;;  %v1566_v4 = vmul.f32 1.0614054, %v3679_v14  ;;  %v3681_v23 = vpop.eup %3680  ;;  %v3583_v9 = vld [vmem:[%s4555_s11 + $0xb8] sm:$0xff]  }
 0x5ed   :  { %v3683_v31 = vpop.eup %3682 }
 0x5ee   :  { %v1569_v5 = vmul.f32 %v3677_v2, %v1567_v15  ;;  %v1568_v6 = vadd.f32 -1.4531521, %v1566_v4  ;;  %3428 = vmatpush3.bf16.msra.mxu1 %v3583_v9 }
 0x5f0   :  { %v1571_v7 = vadd.f32 1.4214138, %v1569_v5  ;;  %v1570_v20 = vmul.f32 %v3679_v14, %v1568_v6 }
 0x5f2   :  { %v1573_v29 = vmul.f32 %v3677_v2, %v1571_v7  ;;  %v1572_v10 = vadd.f32 1.4214138, %v1570_v20 }
 0x5f4   :  { %v1575_v30 = vadd.f32 -0.28449672, %v1573_v29  ;;  %v1574_v36 = vmul.f32 %v3679_v14, %v1572_v10 }
 0x5f6   :  { %v1577_v11 = vmul.f32 %v3677_v2, %v1575_v30  ;;  %v1576_v13 = vadd.f32 -0.28449672, %v1574_v36 }
 0x5f8   :  { %v1579_v16 = vadd.f32 0.2548296, %v1577_v11  ;;  %v1578_v17 = vmul.f32 %v3679_v14, %v1576_v13  ;;  %v3584_v13 = vld [vmem:[%s4557_s13] sm:$0xff]  }
 0x5fa   :  { %v1581_v21 = vmul.f32 %v3677_v2, %v1579_v16  ;;  %v1580_v24 = vadd.f32 0.2548296, %v1578_v17  ;;  %v3581_v2 = vld [vmem:[%s4555_s11 + $0x38] sm:$0xff]   ;;  %v3587_v16 = vld [vmem:[%s4558_s14 + $0x40] sm:$0xff]  }
 0x5fb   :  { %v3588_v17 = vld [vmem:[%s4558_s14] sm:$0xff]   ;;  %3209 = vmatprep.subr.bf16.mxu1 %v3587_v16 }
 0x5fc   :  { %v1591_v25 = vmul.f32 %v3681_v23, %v1581_v21  ;;  %v1582_v28 = vmul.f32 %v3679_v14, %v1580_v24  ;;  %v3590_v21 = vld [vmem:[%s4558_s14 + $0x48] sm:$0xff]   ;;  %v3593_v24 = vld [vmem:[%s4558_s14 + $0x50] sm:$0xff]  }
 0x5fd   :  { %v3591_v23 = vld [vmem:[%s4558_s14 + $0x8] sm:$0xff]  }
 0x5fe   :  { %v1593_v32 = vsub.f32 1.0, %v1591_v25  ;;  %v1592_v37 = vmul.f32 %v3683_v31, %v1582_v28  ;;  %v3594_v25 = vld [vmem:[%s4558_s14 + $0x10] sm:$0xff]   ;;  %v3596_v28 = vld [vmem:[%s4558_s14 + $0x58] sm:$0xff]  }
 0x5ff   :  { %v3597_v31 = vld [vmem:[%s4558_s14 + $0x18] sm:$0xff]  }
 0x600   :  { %v1595_v38 = vmul.f32 %v1593_v32, %v1555_v35  ;;  %v1594_v39 = vsub.f32 1.0, %v1592_v37  ;;  %v3599_v32 = vld [vmem:[%s4558_s14 + $0x60] sm:$0xff]   ;;  %v3602_v37 = vld [vmem:[%s4558_s14 + $0x68] sm:$0xff]  }
 0x601   :  { %v3600_v35 = vld [vmem:[%s4558_s14 + $0x20] sm:$0xff]  }
 0x602   :  { %v1597_v43 = vadd.f32 1.0, %v1595_v38  ;;  %v1596_v44 = vmul.f32 %v1594_v39, %v1556_v41  ;;  %v3603_v38 = vld [vmem:[%s4558_s14 + $0x28] sm:$0xff]   ;;  %v3605_v39 = vld [vmem:[%s4558_s14 + $0x70] sm:$0xff]  }
 0x604   :  { %v1598_v46 = vadd.f32 1.0, %v1596_v44  ;;  %v1599_v48 = vmul.f32 %v1597_v43, %v1549_v42 }
 0x606   :  { %v1600_v49 = vmul.f32 %v1598_v46, %v1550_v45  ;;  %v2950_v46 = vld [vmem:[%s4556_s12] ss:$0 sm:$0xff] }
 0x608   :  { %v1607_v51 = vpack.c.bf16 %v1600_v49, %v1599_v48 }
 0x60a   :  { %3400 = vmatpush3.bf16.msra.mxu0 %v1607_v51 }
 0x60b   :  { %3175 = vmatprep.subr.bf16.mxu0 %v3560_v12 }
 0x60d   :  { %3402 = vmatmul.mubr.msk.bf16.vlgmr.msra.gmra.mrb[28].mxu0 %vm1623_vm13, %v3557_v50 }
 0x60e   :  { %3405 = vmatprep.mubr.msk.bf16.mxu0 %vm3722_vm6, %v3721_v27  ;;  %3176 = vmatpush3.bf16.msra.mxu0 %v3561_v52 }
 0x60f   :  { %3177 = vmatprep.subr.bf16.mxu0 %v3562_v53 }
 0x612   :  { %3178 = vmatpush3.bf16.msra.mxu0 %v3563_v55 }
 0x613   :  { %3179 = vmatprep.subr.bf16.mxu0 %v3564_v19 }
 0x615   :  { %3406 = vmatmul.mubr.msk.bf16.gmra.mrb[32].mxu0 %vm1623_vm13, %v3558_v54 }
 0x616   :  { %3409 = vmatprep.mubr.msk.bf16.mxu0 %vm3722_vm6, %v3721_v27  ;;  %3180 = vmatpush3.bf16.msra.mxu0 %v3566_v56 }
 0x617   :  { %3181 = vmatprep.subr.bf16.mxu0 %v3567_v57 }
 0x61a   :  { %3182 = vmatpush3.bf16.msra.mxu0 %v3569_v58 }
 0x61b   :  { %3183 = vmatprep.subr.bf16.mxu0 %v3570_v18 }
 0x61d   :  { %3410 = vmatmul.mubr.msk.bf16.gmra.mrb[36].mxu0 %vm1623_vm13, %v3559_v59 }
 0x61e   :  { %3184 = vmatpush3.bf16.msra.mxu0 %v3572_v60 }
 0x61f   :  { %3185 = vmatprep.subr.bf16.mxu0 %v3573_v33 }
 0x622   :  { %3186 = vmatpush3.bf16.msra.mxu0 %v3575_v26 }
 0x623   :  { %3187 = vmatprep.subr.bf16.mxu0 %v3576_v34 }
 0x626   :  { %3188 = vmatpush3.bf16.msra.mxu0 %v3578_v63 }
 0x627   :  { %3189 = vmatprep.subr.bf16.mxu0 %v3579_v0 }
 0x62a   :  { %3190 = vmatpush3.bf16.msra.mxu0 %v3581_v2 }
 0x6e0   :  { %v1667_v14 = vpop.f32.mrb[28].mxu0 }
 0x6e1   :  { %v3403_v15 = vpop.f32.mrb[29].mxu0 }
 0x6e2   :  { %v1670_v22 = vpop.f32.mrb[30].mxu0 }
 0x6e3   :  { %v1690_v3 = vpack.c.bf16 %v1670_v22, %v1667_v14  ;;  %v3404_v4 = vpop.f32.mrb[31].mxu0 }
 0x6e8   :  { %v1675_v5 = vpop.f32.mrb[32].mxu0 }
 0x6e9   :  { %v3407_v6 = vpop.f32.mrb[33].mxu0 }
 0x6ea   :  { %v1678_v7 = vpop.f32.mrb[34].mxu0 }
 0x6eb   :  { %v1691_v8 = vpack.c.bf16 %v1678_v7, %v1675_v5  ;;  %v3408_v20 = vpop.f32.mrb[35].mxu0 }
 0x6ed   :  { %1924 = vmatprep.mubr.bf16.mxu0 %v1691_v8 }
 0x6ee   :  { %1925 = vmatmul.mubr.bf16.vlgmr.msra.gmra.mrb[40].mxu0 %v1690_v3 }
 0x6ef   :  { %3435 = vmatprep.mubr.msk.bf16.mxu0 %vm1623_vm13, %v3584_v13 }
 0x6f0   :  { %v1683_v29 = vpop.f32.mrb[36].mxu0 }
 0x6f1   :  { %v3411_v10 = vpop.f32.mrb[37].mxu0 }
 0x6f2   :  { %v1686_v30 = vpop.f32.mrb[38].mxu0 }
 0x6f3   :  { %v1692_v36 = vpack.c.bf16 %v1686_v30, %v1683_v29  ;;  %v3412_v11 = vpop.f32.mrb[39].mxu0 }
 0x6f5   :  { %3430 = vmatmul.mubr.bf16.vlgmr.msra.gmra.mrb[40].mxu1 %v1692_v36 }
 0x6f6   :  { %3210 = vmatpush3.bf16.msra.mxu1 %v3588_v17 }
 0x6f7   :  { %3211 = vmatprep.subr.bf16.mxu1 %v3590_v21 }
 0x6fa   :  { %3212 = vmatpush3.bf16.msra.mxu1 %v3591_v23 }
 0x6fb   :  { %3213 = vmatprep.subr.bf16.mxu1 %v3593_v24 }
 0x6fe   :  { %3214 = vmatpush3.bf16.msra.mxu1 %v3594_v25 }
 0x6ff   :  { %3215 = vmatprep.subr.bf16.mxu1 %v3596_v28 }
 0x702   :  { %3216 = vmatpush3.bf16.msra.mxu1 %v3597_v31 }
 0x703   :  { %3217 = vmatprep.subr.bf16.mxu1 %v3599_v32 }
 0x706   :  { %3218 = vmatpush3.bf16.msra.mxu1 %v3600_v35 }
 0x707   :  { %3219 = vmatprep.subr.bf16.mxu1 %v3602_v37 }
 0x70a   :  { %3220 = vmatpush3.bf16.msra.mxu1 %v3603_v38 }
 0x70b   :  { %3221 = vmatprep.subr.bf16.mxu1 %v3605_v39 }
 0x7c1   :  { %v3191_v41 = vpop.f32.mrb[40].mxu0 }
 0x7c2   :  { %v3192_v43 = vpop.f32.mrb[41].mxu0 }
 0x7c3   :  { %v3193_v44 = vadd.f32 %v3192_v43, %v3191_v41  ;;  %v3194_v42 = vpop.f32.mrb[42].mxu0 }
 0x7c4   :  { %v3195_v45 = vpop.f32.mrb[43].mxu0 }
 0x7c5   :  { %v3196_v48 = vadd.f32 %v3195_v45, %v3194_v42  ;;  %v1927_v49 = vadd.f32 %v3193_v44, %v2950_v46  ;;  %v3585_v45 = vld [vmem:[%s4557_s13 + $0x8] ss:$0 sps:$4 sm:$0xff]  }
 0x7c7   :  { %v1930_v52 = vadd.f32 %v3196_v48, %v2950_v46  ;;  %v3586_v46 = vld [vmem:[%s4558_s14 + $0x80] sm:$0xff]   ;;  %v3589_v48 = vld [vmem:[%s4558_s14 + $0x88] sm:$0xff]  }
 0x7c8   :  { %v1967_v12 = vpop.f32.mrb[40].mxu1 }
 0x7c9   :  { %v1968_v51 = vadd.f32 %v1967_v12, %v1927_v49  ;;  %v3431_v50 = vpop.f32.mrb[41].mxu1  ;;  %v3592_v49 = vld [vmem:[%s4558_s14 + $0x90] sm:$0xff]   ;;  %v3595_v12 = vld [vmem:[%s4558_s14 + $0x98] sm:$0xff]  }
 0x7ca   :  { %v1970_v53 = vpop.f32.mrb[42].mxu1  ;;  %v3601_v50 = vld [vmem:[%s4558_s14 + $0xa8] sm:$0xff]  }
 0x7cb   :  { %v1976_v55 = vmul.f32 0.70710677, %v1968_v51  ;;  %v1971_v19 = vadd.f32 %v1970_v53, %v1930_v52  ;;  %v3432_v54 = vpop.f32.mrb[43].mxu1  ;;  %v1974_v38 = vmul.f32 0.5, %v1968_v51  ;;  %v3598_v51 = vld [vmem:[%s4558_s14 + $0xa0] sm:$0xff]   ;;  %v3604_v52 = vld [vmem:[%s4558_s14 + $0xb0] sm:$0xff]  }
 0x7cc   :  { %v3606_v53 = vld [vmem:[%s4558_s14 + $0x30] sm:$0xff]   ;;  %v3609_v54 = vld [vmem:[%s4558_s14 + $0x38] sm:$0xff]  }
 0x7cd   :  { %v1982_v56 = vand.u32 2147483647, %v1976_v55  ;;  %v1977_v57 = vmul.f32 0.70710677, %v1971_v19  ;;  %vm1978_vm14 = vcmp.ge.f32.partialorder %v1976_v55, 0.0  ;;  %v1975_v39 = vmul.f32 0.5, %v1971_v19  ;;  %3222 = vmatpush3.bf16.msra.mxu1 %v3606_v53 }
 0x7ce   :  { %v1980_v24 = vsel %vm1978_vm14, 1.0, %v3720_v47  ;;  %v3607_v55 = vld [vmem:[%s4558_s14 + $0xb8] sm:$0xff]   ;;  %v3613_v53 = vld [vmem:[%s4561_s17 + $0xc0] sm:$0xff]  }
 0x7cf   :  { %v1984_v58 = vmul.f32 0.3275911, %v1982_v56  ;;  %v1983_v18 = vand.u32 2147483647, %v1977_v57  ;;  %v2008_v61 = vsub.f32 0.0, %v1982_v56  ;;  %vm1979_vm15 = vcmp.ge.f32.partialorder %v1977_v57, 0.0 }
 0x7d0   :  { %v1981_v32 = vsel %vm1979_vm15, 1.0, %v3720_v47  ;;  %v3608_v19 = vld [vmem:[%s4558_s14 + $0x78] sm:$0xff]  }
 0x7d1   :  { %v1986_v59 = vadd.f32 1.0, %v1984_v58  ;;  %v1985_v60 = vmul.f32 0.3275911, %v1983_v18  ;;  %v2009_v26 = vsub.f32 0.0, %v1983_v18  ;;  %v2010_v62 = vmul.f32 %v2008_v61, %v1982_v56  ;;  %3223 = vmatprep.subr.bf16.mxu1 %v3608_v19  ;;  %v3612_v61 = vld [vmem:[%s4561_s17 + $0x40] sm:$0xff]   ;;  %v3611_v19 = vld [vmem:[%s4560_s16 + $0x8] sm:$0xff]  }
 0x7d2   :  { %3224 = vmatpush3.bf16.msra.mxu1 %v3609_v54  ;;  %v3617_v54 = vld [vmem:[%s4561_s17 + $0xc8] sm:$0xff]  }
 0x7d3   :  { %3684 = vrcp.f32 %v1986_v59  ;;  %v1987_v33 = vadd.f32 1.0, %v1985_v60  ;;  %v2011_v2 = vmul.f32 %v2009_v26, %v1983_v18  ;;  %v2012_v40 = vmul.f32 1.442695, %v2010_v62  ;;  %v3614_v26 = vld [vmem:[%s4561_s17] sm:$0xff]   ;;  %v3618_v62 = vld [vmem:[%s4561_s17 + $0x8] sm:$0xff]  }
 0x7d5   :  { %3686 = vrcp.f32 %v1987_v33  ;;  %v2014_v3 = vmul.f32 1.442695, %v2011_v2  ;;  %v3610_v33 = vld [vmem:[%s4560_s16] sm:$0xff]   ;;  %v3626_v2 = vld [vmem:[%s4561_s17 + $0x18] sm:$0xff]  }
 0x7d6   :  { %3688 = vpow2.f32 %v2012_v40  ;;  %v3628_v40 = vld [vmem:[%s4561_s17 + $0x60] sm:$0xff]  }
 0x7d7   :  { %3690 = vpow2.f32 %v2014_v3 }
 0x7dd   :  { %v3685_v34 = vpop.eup %3684 }
 0x7de   :  { %v1990_v63 = vmul.f32 1.0614054, %v3685_v34 }
 0x7df   :  { %v3687_v0 = vpop.eup %3686 }
 0x7e0   :  { %v1992_v1 = vadd.f32 -1.4531521, %v1990_v63  ;;  %v1991_v9 = vmul.f32 1.0614054, %v3687_v0  ;;  %v3689_v11 = vpop.eup %3688  ;;  %v3620_v63 = vld [vmem:[%s4561_s17 + $0x50] sm:$0xff]  }
 0x7e1   :  { %v3691_v21 = vpop.eup %3690 }
 0x7e2   :  { %v1994_v14 = vmul.f32 %v3685_v34, %v1992_v1  ;;  %v1993_v15 = vadd.f32 -1.4531521, %v1991_v9  ;;  %v3624_v1 = vld [vmem:[%s4561_s17 + $0x58] sm:$0xff]   ;;  %v3630_v9 = vld [vmem:[%s4561_s17 + $0x20] sm:$0xff]  }
 0x7e4   :  { %v1996_v22 = vadd.f32 1.4214138, %v1994_v14  ;;  %v1995_v4 = vmul.f32 %v3687_v0, %v1993_v15  ;;  %v3632_v14 = vld [vmem:[%s4561_s17 + $0x68] sm:$0xff]  }
 0x7e5   :  { %v3634_v15 = vld [vmem:[%s4561_s17 + $0x28] sm:$0xff]  }
 0x7e6   :  { %v1998_v5 = vmul.f32 %v3685_v34, %v1996_v22  ;;  %v1997_v6 = vadd.f32 1.4214138, %v1995_v4  ;;  %v3636_v22 = vld [vmem:[%s4561_s17 + $0x70] sm:$0xff]  }
 0x7e8   :  { %v2000_v7 = vadd.f32 -0.28449672, %v1998_v5  ;;  %v1999_v8 = vmul.f32 %v3687_v0, %v1997_v6 }
 0x7ea   :  { %v2002_v20 = vmul.f32 %v3685_v34, %v2000_v7  ;;  %v2001_v29 = vadd.f32 -0.28449672, %v1999_v8  ;;  %v2979_v8 = vld [vmem:[%s4559_s15] ss:$0 sm:$0xff] }
 0x7ec   :  { %v2004_v10 = vadd.f32 0.2548296, %v2002_v20  ;;  %v2003_v30 = vmul.f32 %v3687_v0, %v2001_v29 }
 0x7ee   :  { %v2006_v36 = vmul.f32 %v3685_v34, %v2004_v10  ;;  %v2005_v13 = vadd.f32 0.2548296, %v2003_v30  ;;  %v3616_v34 = vld [vmem:[%s4561_s17 + $0x48] sm:$0xff]  }
 0x7f0   :  { %v2016_v16 = vmul.f32 %v3689_v11, %v2006_v36  ;;  %v2007_v17 = vmul.f32 %v3687_v0, %v2005_v13  ;;  %v3622_v0 = vld [vmem:[%s4561_s17 + $0x10] sm:$0xff]  }
 0x7f2   :  { %v2018_v23 = vsub.f32 1.0, %v2016_v16  ;;  %v2017_v25 = vmul.f32 %v3691_v21, %v2007_v17 }
 0x7f4   :  { %v2020_v28 = vmul.f32 %v2018_v23, %v1980_v24  ;;  %v2019_v31 = vsub.f32 1.0, %v2017_v25 }
 0x7f6   :  { %v2022_v35 = vadd.f32 1.0, %v2020_v28  ;;  %v2021_v37 = vmul.f32 %v2019_v31, %v1981_v32 }
 0x7f8   :  { %v2023_v41 = vadd.f32 1.0, %v2021_v37  ;;  %v2024_v43 = vmul.f32 %v2022_v35, %v1974_v38 }
 0x7fa   :  { %v2025_v44 = vmul.f32 %v2023_v41, %v1975_v39 }
 0x7fc   :  { %v2029_v42 = vpack.c.bf16 %v2025_v44, %v2024_v43 }
 0x7fe   :  { %3433 = vmatprep.subr.bf16.mxu0 %v2029_v42 }
 0x7ff   :  { %3434 = vmatpush3.bf16.msra.mxu0 %v2029_v42 }
 0x800   :  { %3439 = vmatprep.subr.bf16.mxu0 %v3721_v27 }
 0x802   :  { %3436 = vmatmul.mubr.msk.bf16.vlgmr.msra.gmra.mrb[44].mxu0 %vm1623_vm13, %v3585_v45 }
 0x803   :  { %3440 = vmatpush3.bf16.msra.mxu0 %v3586_v46  ;;  %3455 = vmatprep.mubr.msk.bf16.mxu0 %vm3722_vm6, %v3721_v27 }
 0x804   :  { %3441 = vmatprep.subr.bf16.mxu0 %v3721_v27 }
 0x807   :  { %3442 = vmatpush3.bf16.msra.mxu0 %v3589_v48 }
 0x808   :  { %3443 = vmatprep.subr.bf16.mxu0 %v3721_v27 }
 0x80b   :  { %3444 = vmatpush3.bf16.msra.mxu0 %v3592_v49 }
 0x80c   :  { %3445 = vmatprep.subr.bf16.mxu0 %v3721_v27 }
 0x80f   :  { %3446 = vmatpush3.bf16.msra.mxu0 %v3595_v12 }
 0x810   :  { %3447 = vmatprep.subr.bf16.mxu0 %v3721_v27 }
 0x813   :  { %3448 = vmatpush3.bf16.msra.mxu0 %v3598_v51 }
 0x814   :  { %3449 = vmatprep.subr.bf16.mxu0 %v3721_v27 }
 0x817   :  { %3450 = vmatpush3.bf16.msra.mxu0 %v3601_v50 }
 0x818   :  { %3451 = vmatprep.subr.bf16.mxu0 %v3721_v27 }
 0x81b   :  { %3452 = vmatpush3.bf16.msra.mxu0 %v3604_v52 }
 0x81c   :  { %3453 = vmatprep.subr.bf16.mxu0 %v3721_v27 }
 0x81f   :  { %3454 = vmatpush3.bf16.msra.mxu0 %v3607_v55 }
 0x820   :  { %3243 = vmatprep.subr.bf16.mxu0 %v3612_v61  ;;  %v3635_v61 = vld [vmem:[%s4561_s17 + $0xa8] sm:$0xff]  }
 0x8d5   :  { %v3437_v27 = vpop.f32.mrb[44].mxu0 }
 0x8d6   :  { %v2094_v56 = vpack.c.bf16 %v3437_v27, %v3437_v27  ;;  %v2078_v57 = vpop.f32.mrb[45].mxu0  ;;  %v3619_v27 = vld [vmem:[%s4561_s17 + $0x88] sm:$0xff]  }
 0x8d7   :  { %v3438_v58 = vpop.f32.mrb[46].mxu0  ;;  %v2092_v60 = vpack.c.bf16 %v2078_v57, %v2078_v57  ;;  %v3623_v57 = vld [vmem:[%s4561_s17 + $0x90] sm:$0xff]  }
 0x8d8   :  { %v2081_v18 = vpop.f32.mrb[47].mxu0  ;;  %3456 = vmatmul.mubr.bf16.vlgmr.msra.gmra.mrb[48].mxu0 %v2094_v56  ;;  %v3621_v56 = vld [vmem:[%s4561_s17 + $0xd0] sm:$0xff]   ;;  %v3625_v58 = vld [vmem:[%s4561_s17 + $0xd8] sm:$0xff]  }
 0x8d9   :  { %v2093_v59 = vpack.c.bf16 %v2081_v18, %v2081_v18  ;;  %3244 = vmatpush3.bf16.msra.mxu0 %v3614_v26  ;;  %v3627_v18 = vld [vmem:[%s4561_s17 + $0x98] sm:$0xff]   ;;  %v3637_v26 = vld [vmem:[%s4561_s17 + $0xf0] sm:$0xff]  }
 0x8da   :  { %3245 = vmatprep.subr.bf16.mxu0 %v3616_v34  ;;  %v3639_v34 = vld [vmem:[%s4561_s17 + $0xb0] sm:$0xff]  }
 0x8db   :  { %2326 = vmatprep.mubr.bf16.mxu1 %v2093_v59  ;;  %v3629_v59 = vld [vmem:[%s4561_s17 + $0xe0] sm:$0xff]  }
 0x8dc   :  { %2327 = vmatmul.mubr.bf16.vlgmr.msra.gmra.mrb[44].mxu1 %v2092_v60  ;;  %v3631_v60 = vld [vmem:[%s4561_s17 + $0xa0] sm:$0xff]  }
 0x8dd   :  { %3461 = vmatprep.mubr.msk.bf16.mxu1 %vm2415_vm0, %v3610_v33  ;;  %3246 = vmatpush3.bf16.msra.mxu0 %v3618_v62  ;;  %v3633_v33 = vld [vmem:[%s4561_s17 + $0xe8] sm:$0xff]   ;;  %v3638_v62 = vld [vmem:[%s4561_s17 + $0x30] sm:$0xff]  }
 0x8de   :  { %3247 = vmatprep.subr.bf16.mxu0 %v3620_v63  ;;  %v3641_v63 = vld [vmem:[%s4561_s17 + $0xf8] sm:$0xff]  }
 0x8e1   :  { %3248 = vmatpush3.bf16.msra.mxu0 %v3622_v0  ;;  %v3640_v0 = vld [vmem:[%s4561_s17 + $0x78] sm:$0xff]  }
 0x8e2   :  { %3249 = vmatprep.subr.bf16.mxu0 %v3624_v1  ;;  %v3643_v1 = vld [vmem:[%s4561_s17 + $0xb8] sm:$0xff]  }
 0x8e5   :  { %3250 = vmatpush3.bf16.msra.mxu0 %v3626_v2  ;;  %v3642_v2 = vld [vmem:[%s4561_s17 + $0x38] sm:$0xff]  }
 0x8e6   :  { %3251 = vmatprep.subr.bf16.mxu0 %v3628_v40 }
 0x8e9   :  { %3252 = vmatpush3.bf16.msra.mxu0 %v3630_v9 }
 0x8ea   :  { %3253 = vmatprep.subr.bf16.mxu0 %v3632_v14 }
 0x8ed   :  { %3254 = vmatpush3.bf16.msra.mxu0 %v3634_v15 }
 0x8ee   :  { %3255 = vmatprep.subr.bf16.mxu0 %v3636_v22 }
 0x8f1   :  { %3256 = vmatpush3.bf16.msra.mxu0 %v3638_v62 }
 0x8f2   :  { %3257 = vmatprep.subr.bf16.mxu0 %v3640_v0 }
 0x8f5   :  { %3258 = vmatpush3.bf16.msra.mxu0 %v3642_v2 }
 0x9ab   :  { %v2368_v3 = vpop.f32.mrb[48].mxu0 }
 0x9ac   :  { %v3457_v4 = vpop.f32.mrb[49].mxu0 }
 0x9ad   :  { %v2371_v5 = vpop.f32.mrb[50].mxu0 }
 0x9ae   :  { %v3458_v6 = vpop.f32.mrb[51].mxu0 }
 0x9af   :  { %v3225_v7 = vpop.f32.mrb[44].mxu1 }
 0x9b0   :  { %v3226_v20 = vpop.f32.mrb[45].mxu1 }
 0x9b1   :  { %v3227_v29 = vadd.f32 %v3226_v20, %v3225_v7  ;;  %v3228_v10 = vpop.f32.mrb[46].mxu1 }
 0x9b2   :  { %v3229_v30 = vpop.f32.mrb[47].mxu1 }
 0x9b3   :  { %v2329_v36 = vadd.f32 %v3227_v29, %v2979_v8 }
 0x9b5   :  { %v2369_v11 = vadd.f32 %v2368_v3, %v2329_v36 }
 0x9b7   :  { %v2375_v13 = vmul.f32 0.70710677, %v2369_v11  ;;  %v2374_v12 = vmul.f32 0.5, %v2369_v11 }
 0x9b9   :  { %v2378_v16 = vand.u32 2147483647, %v2375_v13  ;;  %vm2376_vm1 = vcmp.ge.f32.partialorder %v2375_v13, 0.0 }
 0x9ba   :  { %v2377_v48 = vsel %vm2376_vm1, 1.0, %v3720_v47  ;;  %v3615_v47 = vld [vmem:[%s4561_s17 + $0x80] sm:$0xff]  }
 0x9bb   :  { %v2379_v17 = vmul.f32 0.3275911, %v2378_v16  ;;  %v2391_v23 = vsub.f32 0.0, %v2378_v16 }
 0x9bd   :  { %v2380_v21 = vadd.f32 1.0, %v2379_v17  ;;  %v2392_v25 = vmul.f32 %v2391_v23, %v2378_v16  ;;  %v3040_v16 = vld [vmem:[%s4562_s18] ss:$0 sm:$0xff] }
 0x9bf   :  { %3692 = vrcp.f32 %v2380_v21  ;;  %v2393_v32 = vmul.f32 1.442695, %v2392_v25 }
 0x9c1   :  { %3694 = vpow2.f32 %v2393_v32 }
 0x9c9   :  { %v3693_v24 = vpop.eup %3692 }
 0x9ca   :  { %v2382_v28 = vmul.f32 1.0614054, %v3693_v24 }
 0x9cb   :  { %v3695_v42 = vpop.eup %3694 }
 0x9cc   :  { %v2383_v31 = vadd.f32 -1.4531521, %v2382_v28 }
 0x9ce   :  { %v2384_v35 = vmul.f32 %v3693_v24, %v2383_v31 }
 0x9d0   :  { %v2385_v37 = vadd.f32 1.4214138, %v2384_v35 }
 0x9d2   :  { %v2386_v38 = vmul.f32 %v3693_v24, %v2385_v37 }
 0x9d4   :  { %v2387_v39 = vadd.f32 -0.28449672, %v2386_v38 }
 0x9d6   :  { %v2388_v41 = vmul.f32 %v3693_v24, %v2387_v39 }
 0x9d8   :  { %v2389_v43 = vadd.f32 0.2548296, %v2388_v41 }
 0x9da   :  { %v2390_v44 = vmul.f32 %v3693_v24, %v2389_v43 }
 0x9dc   :  { %v2395_v45 = vmul.f32 %v3695_v42, %v2390_v44 }
 0x9de   :  { %v2396_v46 = vsub.f32 1.0, %v2395_v45 }
 0x9e0   :  { %v2397_v49 = vmul.f32 %v2396_v46, %v2377_v48 }
 0x9e2   :  { %v2398_v51 = vadd.f32 1.0, %v2397_v49 }
 0x9e4   :  { %v2399_v50 = vmul.f32 %v2398_v51, %v2374_v12 }
 0x9e6   :  { %v2404_v52 = vpack.c.bf16 %v2399_v50, %v2399_v50 }
 0x9e8   :  { %3465 = vmatprep.subr.msk.bf16.mxu1 %vm2422_vm2, %v2404_v52  ;;  %v2424_v55 = vsel %vm2422_vm2, %v2404_v52, 0 }
 0x9e9   :  { %3460 = vmatpush3.bf16.msra.mxu1 %v2424_v55 }
 0x9ea   :  { %3265 = vmatprep.subr.bf16.mxu1 %v3613_v53 }
 0x9ec   :  { %3462 = vmatmul.mubr.msk.bf16.vlgmr.msra.gmra.mrb[48].mxu1 %vm2415_vm0, %v3611_v19 }
 0x9ed   :  { %3266 = vmatpush3.bf16.msra.mxu1 %v3615_v47 }
 0x9ee   :  { %3267 = vmatprep.subr.bf16.mxu1 %v3617_v54 }
 0x9f1   :  { %3268 = vmatpush3.bf16.msra.mxu1 %v3619_v27 }
 0x9f2   :  { %3269 = vmatprep.subr.bf16.mxu1 %v3621_v56 }
 0x9f5   :  { %3270 = vmatpush3.bf16.msra.mxu1 %v3623_v57 }
 0x9f6   :  { %3271 = vmatprep.subr.bf16.mxu1 %v3625_v58 }
 0x9f9   :  { %3272 = vmatpush3.bf16.msra.mxu1 %v3627_v18 }
 0x9fa   :  { %3273 = vmatprep.subr.bf16.mxu1 %v3629_v59 }
 0x9fd   :  { %3274 = vmatpush3.bf16.msra.mxu1 %v3631_v60 }
 0x9fe   :  { %3275 = vmatprep.subr.bf16.mxu1 %v3633_v33 }
 0xa01   :  { %3276 = vmatpush3.bf16.msra.mxu1 %v3635_v61 }
 0xa02   :  { %3277 = vmatprep.subr.bf16.mxu1 %v3637_v26 }
 0xa05   :  { %3278 = vmatpush3.bf16.msra.mxu1 %v3639_v34 }
 0xa06   :  { %3279 = vmatprep.subr.bf16.mxu1 %v3641_v63 }
 0xa09   :  { %3280 = vmatpush3.bf16.msra.mxu1 %v3643_v1 }
 0xabf   :  { %v3463_v40 = vpop.f32.mrb[48].mxu1 }
 0xac0   :  { %v2460_v9 = vpop.f32.mrb[49].mxu1  ;;  %v2477_v3 = vpack.c.bf16 %v3463_v40, %v3463_v40 }
 0xac1   :  { %v3464_v14 = vpop.f32.mrb[50].mxu1  ;;  %v2475_v5 = vpack.c.bf16 %v2460_v9, %v2460_v9 }
 0xac2   :  { %v2478_v15 = vpack.c.bf16 %v3464_v14, %v3464_v14  ;;  %v2463_v22 = vpop.f32.mrb[51].mxu1 }
 0xac3   :  { %v2476_v4 = vpack.c.bf16 %v2463_v22, %v2463_v22 }
 0xac4   :  { %2807 = vmatprep.mubr.bf16.mxu1 %v2478_v15 }
 0xac5   :  { %2767 = vmatprep.mubr.bf16.mxu0 %v2476_v4  ;;  %2808 = vmatmul.mubr.bf16.vlgmr.msra.gmra.mrb[52].mxu1 %v2477_v3 }
 0xac6   :  { %2768 = vmatmul.mubr.bf16.vlgmr.msra.gmra.mrb[52].mxu0 %v2475_v5 }
 0xb98   :  { %v3281_v6 = vpop.f32.mrb[52].mxu1 }
 0xb99   :  { %v3259_v7 = vpop.f32.mrb[52].mxu0  ;;  %v3282_v8 = vpop.f32.mrb[53].mxu1 }
 0xb9a   :  { %v3260_v20 = vpop.f32.mrb[53].mxu0  ;;  %v3283_v29 = vadd.f32 %v3282_v8, %v3281_v6  ;;  %v3284_v10 = vpop.f32.mrb[54].mxu1 }
 0xb9b   :  { %v3261_v30 = vadd.f32 %v3260_v20, %v3259_v7  ;;  %v3262_v36 = vpop.f32.mrb[54].mxu0  ;;  %v3285_v11 = vpop.f32.mrb[55].mxu1 }
 0xb9c   :  { %v3263_v13 = vpop.f32.mrb[55].mxu0 }
 0xb9d   :  { %v2810_v17 = vadd.f32 %v3283_v29, %v3261_v30 }
 0xb9f   :  { %v2822_v21 = vadd.f32 %v3040_v16, %v2810_v17 }
 0xba1   :  { %2824 = vst.msk [vmem:[#allocation2] sm:$0x3] %vm2823_vm3, %v2822_v21 }
 0xba2   :  { %3707 = shalt.err (!%p3704_p4)
}
 0xba3   :  { %s3708_s11 = scalar_lea.hbm %s4563_s19, 32 }
 0xba4   :  { %p3709_p5 = scmp.ne.s32.totalorder %s4563_s19, %s3708_s11  ;;  %p3712_p6 = scmp.lt.u32.totalorder %s3708_s11, %s4563_s19 }
 0xba6   :  { %p3714_p7 = pnand %p3712_p6, %p3709_p5 }
 0xba8   :  { %3717 = shalt.err (!%p3714_p7)
}
 0xba9   :  { %2834 = dma.vmem_to_hbm [thread:$0]  %s2832_s21, 32, %s4563_s19, [#allocation3]  }
 0xbaa   :  { %3718 = dma.done.wait [#allocation3], 32  }
 0xbab   :  { %3719 = vsyncadd [#allocation3], 4294967264 }
 0xbac   :  { %2838 = vsyncpa [#allocation3], 1 }

</bundles_post_ra>
